<compile_context>
chip_gen: v7x
topology: tpu7x:2x2x1
jax: 0.10.0
libtpu: 0.0.40
codegen_flags: <defaults>
</compile_context>

<pallas_src>
import jax
import jax.numpy as jnp
from jax import lax
from jax.experimental import pallas as pl
from jax.experimental.pallas import tpu as pltpu

LEAKY_SLOPE = 0.01   # nn.LeakyReLU() default
BN_EPS = 1e-5        # nn.BatchNorm2d default


def _round_up(x, m):
    return (x + m - 1) // m * m


# ---------------- Fused Pallas kernel -------------------------------------------------

def _fused_block_kernel(x_top_ref, x_mid_ref, x_bot_ref,
                        w1_ref, shift1_ref, w2_ref, shift2_ref, o_ref):
    # x_*: bf16 blocks of the (N, H, W, Cp) input.
    #   x_mid: (1, TH, W, Cp) row tile (also the residual)
    #   x_top/x_bot: (1, 1, W, Cp) halo rows (clamped index, masked at the border)
    # w1: (Cp, Crp) bf16 (BN scale folded), shift1: (1, Crp) f32
    # w2: (9, Crp, Cp) bf16 (BN scale folded), shift2: (1, Cp) f32
    # o : (1, TH, W, Cp) f32
    _, TH, W, Cp = x_mid_ref.shape
    Crp = w1_ref.shape[1]
    t = pl.program_id(1)
    n_tiles = pl.num_programs(1)

    def conv1_bn_lrelu(x2d):
        # (rows, Cp) bf16 -> (rows, Crp) f32
        y = jnp.dot(x2d, w1_ref[...], preferred_element_type=jnp.float32)
        y = y + shift1_ref[...]
        return jnp.where(y > 0, y, LEAKY_SLOPE * y)

    x_mid = x_mid_ref[...].reshape(TH * W, Cp)                    # bf16
    h_mid = conv1_bn_lrelu(x_mid).reshape(TH, W, Crp)             # f32

    # Halo rows: recompute the 1x1 conv on one neighbouring image row.  At the
    # image top/bottom the halo is layer2's zero padding -> mask to exactly 0.
    h_top = conv1_bn_lrelu(x_top_ref[...].reshape(W, Cp))
    h_top = h_top * (t > 0).astype(h_top.dtype)
    h_bot = conv1_bn_lrelu(x_bot_ref[...].reshape(W, Cp))
    h_bot = h_bot * (t < n_tiles - 1).astype(h_bot.dtype)

    # Assemble zero-padded (TH+2, W+2, Crp) activation block (f32) for the 3x3.
    h = jnp.concatenate([h_top[None], h_mid, h_bot[None]], axis=0)
    zcol = jnp.zeros((TH + 2, 1, Crp), h.dtype)
    h = jnp.concatenate([zcol, h, zcol], axis=1)

    # 3x3 conv as 9 accumulated shifted matmuls (no im2col materialization).
    acc = jnp.zeros((TH * W, Cp), jnp.float32)
    for kh in range(3):
        for kw in range(3):
            patch = h[kh:kh + TH, kw:kw + W, :].reshape(TH * W, Crp)
            acc = acc + jnp.dot(patch.astype(jnp.bfloat16),
                                w2_ref[kh * 3 + kw],
                                preferred_element_type=jnp.float32)

    y = acc + shift2_ref[...]
    y = jnp.where(y > 0, y, LEAKY_SLOPE * y)
    y = y + x_mid.astype(jnp.float32)                             # residual add
    o_ref[...] = y.reshape(1, TH, W, Cp).astype(o_ref.dtype)


# ---------------- Wrapper --------------------------------------------------------------

def _fold_bn(bn):
    scale = bn["gamma"] * lax.rsqrt(bn["var"] + BN_EPS)
    shift = bn["beta"] - bn["mean"] * scale
    return scale, shift


def _pick_tile_h(H, W, target_rows=512):
    best = 1
    for d in range(1, H + 1):
        if H % d == 0 and d * W <= max(W, target_rows):
            best = d
    return best


def dark_residual_block(x_nchw, params, *, tile_h=None):
    N, C, H, W = x_nchw.shape
    Cr = C // 2
    Cp = _round_up(max(C, 128), 128)      # lane-dense channel padding
    Crp = _round_up(max(Cr, 128), 128)

    if tile_h is None:
        tile_h = _pick_tile_h(H, W)
    assert H % tile_h == 0, "row tile must divide H"
    num_t = H // tile_h

    # NCHW -> NHWC, pad channels to a multiple of 128, cast to bf16 for the MXU.
    x_nhwc = jnp.transpose(x_nchw, (0, 2, 3, 1))
    x_p = jnp.pad(x_nhwc, ((0, 0), (0, 0), (0, 0), (0, Cp - C))).astype(jnp.bfloat16)

    # Fold BN scale into the conv weights; only the shift is applied in-kernel.
    scale1, shift1 = _fold_bn(params["bn1"])
    scale2, shift2 = _fold_bn(params["bn2"])

    w1 = params["w1"][:, :, 0, 0].T * scale1[None, :]                         # (C, Cr)
    w1_p = jnp.zeros((Cp, Crp), jnp.float32).at[:C, :Cr].set(w1).astype(jnp.bfloat16)
    shift1_p = jnp.zeros((1, Crp), jnp.float32).at[0, :Cr].set(shift1)

    # (Cout, Cin, kh, kw) -> (kh, kw, Cin, Cout), fold scale over Cout.
    w2 = jnp.transpose(params["w2"], (2, 3, 1, 0)) * scale2[None, None, None, :]
    w2 = w2.reshape(9, Cr, C)
    w2_p = jnp.zeros((9, Crp, Cp), jnp.float32).at[:, :Cr, :C].set(w2).astype(jnp.bfloat16)
    shift2_p = jnp.zeros((1, Cp), jnp.float32).at[0, :C].set(shift2)

    rows = N * H * W
    cost = pl.CostEstimate(
        flops=2 * rows * (Cp * Crp + 9 * Crp * Cp),
        transcendentals=0,
        bytes_accessed=int(x_p.size * 2 + (w1_p.size + w2_p.size) * 2
                           + (shift1_p.size + shift2_p.size) * 4 + rows * Cp * 4),
    )

    out_p = pl.pallas_call(
        _fused_block_kernel,
        out_shape=jax.ShapeDtypeStruct((N, H, W, Cp), jnp.float32),
        grid_spec=pltpu.PrefetchScalarGridSpec(
            num_scalar_prefetch=0,
            grid=(N, num_t),
            in_specs=[
                # top halo row (clamped at the image boundary, masked in-kernel)
                pl.BlockSpec((1, 1, W, Cp),
                             lambda n, t: (n, jnp.maximum(t * tile_h - 1, 0), 0, 0)),
                # main row tile (also used as the residual)
                pl.BlockSpec((1, tile_h, W, Cp), lambda n, t: (n, t, 0, 0)),
                # bottom halo row
                pl.BlockSpec((1, 1, W, Cp),
                             lambda n, t: (n, jnp.minimum((t + 1) * tile_h, H - 1), 0, 0)),
                # weights / shifts stay resident in VMEM (constant index maps)
                pl.BlockSpec((Cp, Crp), lambda n, t: (0, 0)),
                pl.BlockSpec((1, Crp), lambda n, t: (0, 0)),
                pl.BlockSpec((9, Crp, Cp), lambda n, t: (0, 0, 0)),
                pl.BlockSpec((1, Cp), lambda n, t: (0, 0)),
            ],
            out_specs=pl.BlockSpec((1, tile_h, W, Cp), lambda n, t: (n, t, 0, 0)),
        ),
        compiler_params=pltpu.CompilerParams(
            dimension_semantics=("parallel", "parallel")),
        cost_estimate=cost,
    )(x_p, x_p, x_p, w1_p, shift1_p, w2_p, shift2_p)

    out = out_p[..., :C]                                 # drop channel padding
    return jnp.transpose(out, (0, 3, 1, 2))              # back to NCHW


# ---------------- Pure-JAX reference (for correctness check) --------------------------

def reference(x, params):
    def conv_bn_lrelu(h, w, bn, pad):
        y = lax.conv_general_dilated(
            h, w, (1, 1), [(pad, pad), (pad, pad)],
            dimension_numbers=("NCHW", "OIHW", "NCHW"))
        scale, shift = _fold_bn(bn)
        y = y * scale[None, :, None, None] + shift[None, :, None, None]
        return jnp.where(y > 0, y, LEAKY_SLOPE * y)

    out = conv_bn_lrelu(x, params["w1"], params["bn1"], 0)
    out = conv_bn_lrelu(out, params["w2"], params["bn2"], 1)
    return out + x


# ---------------- Parameter init + driver ----------------------------------------------

def make_params(key, in_channels):
    cr = in_channels // 2
    k = jax.random.split(key, 10)

    def bn(kg, kb, km, kv, c):
        return {
            "gamma": jax.random.uniform(kg, (c,), jnp.float32, 0.5, 1.5),
            "beta": 0.1 * jax.random.normal(kb, (c,), jnp.float32),
            "mean": 0.1 * jax.random.normal(km, (c,), jnp.float32),
            "var": jax.random.uniform(kv, (c,), jnp.float32, 0.5, 1.5),
        }

    return {
        "w1": 0.3 * jax.random.normal(k[0], (cr, in_channels, 1, 1), jnp.float32),
        "bn1": bn(k[1], k[2], k[3], k[4], cr),
        "w2": 0.3 * jax.random.normal(k[5], (in_channels, cr, 3, 3), jnp.float32),
        "bn2": bn(k[6], k[7], k[8], k[9], in_channels),
    }


if __name__ == "__main__":
    key = jax.random.PRNGKey(0)
    kx, kp = jax.random.split(key)

    N, C, H, W = 2, 4, 16, 16
    x = jax.random.normal(kx, (N, C, H, W), jnp.float32)
    params = make_params(kp, C)

    # tile_h=8 -> two row tiles per image, so the inter-tile halo path is exercised.
    out = dark_residual_block(x, params, tile_h=8)
    out = jax.block_until_ready(out)

    ref = jax.block_until_ready(reference(x, params))
    assert out.shape == (N, C, H, W)
    err = float(jnp.max(jnp.abs(out - ref)))
    tol = 3e-2 * (float(jnp.max(jnp.abs(ref))) + 1.0)   # bf16 MXU operands
    assert err < tol, f"mismatch vs reference: err={err} tol={tol}"

    print("KERNEL_OK")
</pallas_src>

<mosaic_0001>
module attributes {stable_mosaic.version = 11 : i64} {
  func.func @_fused_block_kernel(%arg0: i32, %arg1: i32, %arg2: memref<1x1x16x128xbf16, #tpu.memory_space<vmem>>, %arg3: memref<1x8x16x128xbf16, #tpu.memory_space<vmem>>, %arg4: memref<1x1x16x128xbf16, #tpu.memory_space<vmem>>, %arg5: memref<128x128xbf16, #tpu.memory_space<vmem>>, %arg6: memref<1x128xf32, #tpu.memory_space<vmem>>, %arg7: memref<9x128x128xbf16, #tpu.memory_space<vmem>>, %arg8: memref<1x128xf32, #tpu.memory_space<vmem>>, %arg9: memref<1x8x16x128xf32, #tpu.memory_space<vmem>>) attributes {dimension_semantics = [#tpu.dimension_semantics<parallel>, #tpu.dimension_semantics<parallel>], iteration_bounds = array<i64: 2, 2>, scalar_prefetch = 0 : i64, scratch_operands = 0 : i64, tpu.core_type = #tpu.core_type<tc>, window_params = [{transform_indices = @transform_0, window_bounds = array<i64: 1, 1, 16, 128>}, {transform_indices = @transform_1, window_bounds = array<i64: 1, 8, 16, 128>}, {transform_indices = @transform_2, window_bounds = array<i64: 1, 1, 16, 128>}, {pipeline_mode = #tpu.pipeline_mode<synchronous>, transform_indices = @transform_3, window_bounds = array<i64: 128, 128>}, {pipeline_mode = #tpu.pipeline_mode<synchronous>, transform_indices = @transform_4, window_bounds = array<i64: 1, 128>}, {pipeline_mode = #tpu.pipeline_mode<synchronous>, transform_indices = @transform_5, window_bounds = array<i64: 9, 128, 128>}, {pipeline_mode = #tpu.pipeline_mode<synchronous>, transform_indices = @transform_6, window_bounds = array<i64: 1, 128>}, {transform_indices = @transform_7, window_bounds = array<i64: 1, 8, 16, 128>}]} {
    %c0 = arith.constant 0 : index
    %c0_0 = arith.constant 0 : index
    %c0_1 = arith.constant 0 : index
    %c0_2 = arith.constant 0 : index
    %0 = vector.load %arg3[%c0, %c0_0, %c0_1, %c0_2] : memref<1x8x16x128xbf16, #tpu.memory_space<vmem>>, vector<1x8x16x128xbf16>
    %1 = vector.shape_cast %0 : vector<1x8x16x128xbf16> to vector<128x128xbf16>
    %c0_3 = arith.constant 0 : index
    %c0_4 = arith.constant 0 : index
    %2 = vector.load %arg5[%c0_3, %c0_4] : memref<128x128xbf16, #tpu.memory_space<vmem>>, vector<128x128xbf16>
    %cst = arith.constant dense<0.000000e+00> : vector<128x128xf32>
    %3 = tpu.matmul %1, %2, %cst {dimension_numbers = #tpu.dot_dimension_numbers<[1], [0], [0], [1], [0, 0, 1, 1], [], []>} : vector<128x128xbf16>, vector<128x128xbf16>, vector<128x128xf32> -> vector<128x128xf32>
    %c0_5 = arith.constant 0 : index
    %c0_6 = arith.constant 0 : index
    %4 = vector.load %arg6[%c0_5, %c0_6] : memref<1x128xf32, #tpu.memory_space<vmem>>, vector<1x128xf32>
    %5 = vector.broadcast %4 : vector<1x128xf32> to vector<128x128xf32>
    %6 = arith.addf %3, %5 : vector<128x128xf32>
    %cst_7 = arith.constant 0.000000e+00 : f32
    %7 = vector.broadcast %cst_7 : f32 to vector<128x128xf32>
    %8 = arith.cmpf ogt, %6, %7 : vector<128x128xf32>
    %cst_8 = arith.constant 0.00999999977 : f32
    %9 = vector.broadcast %cst_8 : f32 to vector<128x128xf32>
    %10 = arith.mulf %9, %6 : vector<128x128xf32>
    %11 = arith.select %8, %6, %10 : vector<128x128xi1>, vector<128x128xf32>
    %12 = vector.shape_cast %11 : vector<128x128xf32> to vector<8x16x128xf32>
    %c0_9 = arith.constant 0 : index
    %c0_10 = arith.constant 0 : index
    %c0_11 = arith.constant 0 : index
    %c0_12 = arith.constant 0 : index
    %13 = vector.load %arg2[%c0_9, %c0_10, %c0_11, %c0_12] : memref<1x1x16x128xbf16, #tpu.memory_space<vmem>>, vector<1x1x16x128xbf16>
    %14 = vector.shape_cast %13 : vector<1x1x16x128xbf16> to vector<16x128xbf16>
    %c0_13 = arith.constant 0 : index
    %c0_14 = arith.constant 0 : index
    %15 = vector.load %arg5[%c0_13, %c0_14] : memref<128x128xbf16, #tpu.memory_space<vmem>>, vector<128x128xbf16>
    %cst_15 = arith.constant dense<0.000000e+00> : vector<16x128xf32>
    %16 = tpu.matmul %14, %15, %cst_15 {dimension_numbers = #tpu.dot_dimension_numbers<[1], [0], [0], [1], [0, 0, 1, 1], [], []>} : vector<16x128xbf16>, vector<128x128xbf16>, vector<16x128xf32> -> vector<16x128xf32>
    %c0_16 = arith.constant 0 : index
    %c0_17 = arith.constant 0 : index
    %17 = vector.load %arg6[%c0_16, %c0_17] : memref<1x128xf32, #tpu.memory_space<vmem>>, vector<1x128xf32>
    %18 = vector.broadcast %17 : vector<1x128xf32> to vector<16x128xf32>
    %19 = arith.addf %16, %18 : vector<16x128xf32>
    %cst_18 = arith.constant 0.000000e+00 : f32
    %20 = vector.broadcast %cst_18 : f32 to vector<16x128xf32>
    %21 = arith.cmpf ogt, %19, %20 : vector<16x128xf32>
    %cst_19 = arith.constant 0.00999999977 : f32
    %22 = vector.broadcast %cst_19 : f32 to vector<16x128xf32>
    %23 = arith.mulf %22, %19 : vector<16x128xf32>
    %24 = arith.select %21, %19, %23 : vector<16x128xi1>, vector<16x128xf32>
    %c0_i32 = arith.constant 0 : i32
    %25 = arith.cmpi sgt, %arg1, %c0_i32 : i32
    %26 = arith.extui %25 : i1 to i32
    %27 = arith.sitofp %26 : i32 to f32
    %28 = vector.broadcast %27 : f32 to vector<16x128xf32>
    %29 = arith.mulf %24, %28 : vector<16x128xf32>
    %c0_20 = arith.constant 0 : index
    %c0_21 = arith.constant 0 : index
    %c0_22 = arith.constant 0 : index
    %c0_23 = arith.constant 0 : index
    %30 = vector.load %arg4[%c0_20, %c0_21, %c0_22, %c0_23] : memref<1x1x16x128xbf16, #tpu.memory_space<vmem>>, vector<1x1x16x128xbf16>
    %31 = vector.shape_cast %30 : vector<1x1x16x128xbf16> to vector<16x128xbf16>
    %c0_24 = arith.constant 0 : index
    %c0_25 = arith.constant 0 : index
    %32 = vector.load %arg5[%c0_24, %c0_25] : memref<128x128xbf16, #tpu.memory_space<vmem>>, vector<128x128xbf16>
    %cst_26 = arith.constant dense<0.000000e+00> : vector<16x128xf32>
    %33 = tpu.matmul %31, %32, %cst_26 {dimension_numbers = #tpu.dot_dimension_numbers<[1], [0], [0], [1], [0, 0, 1, 1], [], []>} : vector<16x128xbf16>, vector<128x128xbf16>, vector<16x128xf32> -> vector<16x128xf32>
    %c0_27 = arith.constant 0 : index
    %c0_28 = arith.constant 0 : index
    %34 = vector.load %arg6[%c0_27, %c0_28] : memref<1x128xf32, #tpu.memory_space<vmem>>, vector<1x128xf32>
    %35 = vector.broadcast %34 : vector<1x128xf32> to vector<16x128xf32>
    %36 = arith.addf %33, %35 : vector<16x128xf32>
    %cst_29 = arith.constant 0.000000e+00 : f32
    %37 = vector.broadcast %cst_29 : f32 to vector<16x128xf32>
    %38 = arith.cmpf ogt, %36, %37 : vector<16x128xf32>
    %cst_30 = arith.constant 0.00999999977 : f32
    %39 = vector.broadcast %cst_30 : f32 to vector<16x128xf32>
    %40 = arith.mulf %39, %36 : vector<16x128xf32>
    %41 = arith.select %38, %36, %40 : vector<16x128xi1>, vector<16x128xf32>
    %c1_i32 = arith.constant 1 : i32
    %42 = arith.cmpi slt, %arg1, %c1_i32 : i32
    %43 = arith.extui %42 : i1 to i32
    %44 = arith.sitofp %43 : i32 to f32
    %45 = vector.broadcast %44 : f32 to vector<16x128xf32>
    %46 = arith.mulf %41, %45 : vector<16x128xf32>
    %47 = vector.shape_cast %29 : vector<16x128xf32> to vector<1x16x128xf32>
    %48 = vector.shape_cast %46 : vector<16x128xf32> to vector<1x16x128xf32>
    %49 = tpu.concatenate %47, %12, %48 in 0 : vector<1x16x128xf32>, vector<8x16x128xf32>, vector<1x16x128xf32> -> vector<10x16x128xf32>
    %cst_31 = arith.constant 0.000000e+00 : f32
    %50 = vector.broadcast %cst_31 : f32 to vector<10x1x128xf32>
    %51 = tpu.concatenate %50, %49, %50 in 1 : vector<10x1x128xf32>, vector<10x16x128xf32>, vector<10x1x128xf32> -> vector<10x18x128xf32>
    %cst_32 = arith.constant 0.000000e+00 : f32
    %52 = vector.broadcast %cst_32 : f32 to vector<128x128xf32>
    %53 = vector.extract_strided_slice %51 {offsets = [0, 0, 0], sizes = [8, 16, 128], strides = [1, 1, 1]} : vector<10x18x128xf32> to vector<8x16x128xf32>
    %54 = vector.shape_cast %53 : vector<8x16x128xf32> to vector<128x128xf32>
    %55 = arith.truncf %54 : vector<128x128xf32> to vector<128x128xbf16>
    %c0_33 = arith.constant 0 : index
    %c0_34 = arith.constant 0 : index
    %c0_35 = arith.constant 0 : index
    %56 = vector.load %arg7[%c0_33, %c0_34, %c0_35] : memref<9x128x128xbf16, #tpu.memory_space<vmem>>, vector<1x128x128xbf16>
    %57 = vector.shape_cast %56 : vector<1x128x128xbf16> to vector<128x128xbf16>
    %cst_36 = arith.constant dense<0.000000e+00> : vector<128x128xf32>
    %58 = tpu.matmul %55, %57, %cst_36 {dimension_numbers = #tpu.dot_dimension_numbers<[1], [0], [0], [1], [0, 0, 1, 1], [], []>} : vector<128x128xbf16>, vector<128x128xbf16>, vector<128x128xf32> -> vector<128x128xf32>
    %59 = arith.addf %52, %58 : vector<128x128xf32>
    %60 = vector.extract_strided_slice %51 {offsets = [0, 1, 0], sizes = [8, 16, 128], strides = [1, 1, 1]} : vector<10x18x128xf32> to vector<8x16x128xf32>
    %61 = vector.shape_cast %60 : vector<8x16x128xf32> to vector<128x128xf32>
    %62 = arith.truncf %61 : vector<128x128xf32> to vector<128x128xbf16>
    %c1 = arith.constant 1 : index
    %c0_37 = arith.constant 0 : index
    %c0_38 = arith.constant 0 : index
    %63 = vector.load %arg7[%c1, %c0_37, %c0_38] : memref<9x128x128xbf16, #tpu.memory_space<vmem>>, vector<1x128x128xbf16>
    %64 = vector.shape_cast %63 : vector<1x128x128xbf16> to vector<128x128xbf16>
    %cst_39 = arith.constant dense<0.000000e+00> : vector<128x128xf32>
    %65 = tpu.matmul %62, %64, %cst_39 {dimension_numbers = #tpu.dot_dimension_numbers<[1], [0], [0], [1], [0, 0, 1, 1], [], []>} : vector<128x128xbf16>, vector<128x128xbf16>, vector<128x128xf32> -> vector<128x128xf32>
    %66 = arith.addf %59, %65 : vector<128x128xf32>
    %67 = vector.extract_strided_slice %51 {offsets = [0, 2, 0], sizes = [8, 16, 128], strides = [1, 1, 1]} : vector<10x18x128xf32> to vector<8x16x128xf32>
    %68 = vector.shape_cast %67 : vector<8x16x128xf32> to vector<128x128xf32>
    %69 = arith.truncf %68 : vector<128x128xf32> to vector<128x128xbf16>
    %c2 = arith.constant 2 : index
    %c0_40 = arith.constant 0 : index
    %c0_41 = arith.constant 0 : index
    %70 = vector.load %arg7[%c2, %c0_40, %c0_41] : memref<9x128x128xbf16, #tpu.memory_space<vmem>>, vector<1x128x128xbf16>
    %71 = vector.shape_cast %70 : vector<1x128x128xbf16> to vector<128x128xbf16>
    %cst_42 = arith.constant dense<0.000000e+00> : vector<128x128xf32>
    %72 = tpu.matmul %69, %71, %cst_42 {dimension_numbers = #tpu.dot_dimension_numbers<[1], [0], [0], [1], [0, 0, 1, 1], [], []>} : vector<128x128xbf16>, vector<128x128xbf16>, vector<128x128xf32> -> vector<128x128xf32>
    %73 = arith.addf %66, %72 : vector<128x128xf32>
    %74 = vector.extract_strided_slice %51 {offsets = [1, 0, 0], sizes = [8, 16, 128], strides = [1, 1, 1]} : vector<10x18x128xf32> to vector<8x16x128xf32>
    %75 = vector.shape_cast %74 : vector<8x16x128xf32> to vector<128x128xf32>
    %76 = arith.truncf %75 : vector<128x128xf32> to vector<128x128xbf16>
    %c3 = arith.constant 3 : index
    %c0_43 = arith.constant 0 : index
    %c0_44 = arith.constant 0 : index
    %77 = vector.load %arg7[%c3, %c0_43, %c0_44] : memref<9x128x128xbf16, #tpu.memory_space<vmem>>, vector<1x128x128xbf16>
    %78 = vector.shape_cast %77 : vector<1x128x128xbf16> to vector<128x128xbf16>
    %cst_45 = arith.constant dense<0.000000e+00> : vector<128x128xf32>
    %79 = tpu.matmul %76, %78, %cst_45 {dimension_numbers = #tpu.dot_dimension_numbers<[1], [0], [0], [1], [0, 0, 1, 1], [], []>} : vector<128x128xbf16>, vector<128x128xbf16>, vector<128x128xf32> -> vector<128x128xf32>
    %80 = arith.addf %73, %79 : vector<128x128xf32>
    %81 = vector.extract_strided_slice %51 {offsets = [1, 1, 0], sizes = [8, 16, 128], strides = [1, 1, 1]} : vector<10x18x128xf32> to vector<8x16x128xf32>
    %82 = vector.shape_cast %81 : vector<8x16x128xf32> to vector<128x128xf32>
    %83 = arith.truncf %82 : vector<128x128xf32> to vector<128x128xbf16>
    %c4 = arith.constant 4 : index
    %c0_46 = arith.constant 0 : index
    %c0_47 = arith.constant 0 : index
    %84 = vector.load %arg7[%c4, %c0_46, %c0_47] : memref<9x128x128xbf16, #tpu.memory_space<vmem>>, vector<1x128x128xbf16>
    %85 = vector.shape_cast %84 : vector<1x128x128xbf16> to vector<128x128xbf16>
    %cst_48 = arith.constant dense<0.000000e+00> : vector<128x128xf32>
    %86 = tpu.matmul %83, %85, %cst_48 {dimension_numbers = #tpu.dot_dimension_numbers<[1], [0], [0], [1], [0, 0, 1, 1], [], []>} : vector<128x128xbf16>, vector<128x128xbf16>, vector<128x128xf32> -> vector<128x128xf32>
    %87 = arith.addf %80, %86 : vector<128x128xf32>
    %88 = vector.extract_strided_slice %51 {offsets = [1, 2, 0], sizes = [8, 16, 128], strides = [1, 1, 1]} : vector<10x18x128xf32> to vector<8x16x128xf32>
    %89 = vector.shape_cast %88 : vector<8x16x128xf32> to vector<128x128xf32>
    %90 = arith.truncf %89 : vector<128x128xf32> to vector<128x128xbf16>
    %c5 = arith.constant 5 : index
    %c0_49 = arith.constant 0 : index
    %c0_50 = arith.constant 0 : index
    %91 = vector.load %arg7[%c5, %c0_49, %c0_50] : memref<9x128x128xbf16, #tpu.memory_space<vmem>>, vector<1x128x128xbf16>
    %92 = vector.shape_cast %91 : vector<1x128x128xbf16> to vector<128x128xbf16>
    %cst_51 = arith.constant dense<0.000000e+00> : vector<128x128xf32>
    %93 = tpu.matmul %90, %92, %cst_51 {dimension_numbers = #tpu.dot_dimension_numbers<[1], [0], [0], [1], [0, 0, 1, 1], [], []>} : vector<128x128xbf16>, vector<128x128xbf16>, vector<128x128xf32> -> vector<128x128xf32>
    %94 = arith.addf %87, %93 : vector<128x128xf32>
    %95 = vector.extract_strided_slice %51 {offsets = [2, 0, 0], sizes = [8, 16, 128], strides = [1, 1, 1]} : vector<10x18x128xf32> to vector<8x16x128xf32>
    %96 = vector.shape_cast %95 : vector<8x16x128xf32> to vector<128x128xf32>
    %97 = arith.truncf %96 : vector<128x128xf32> to vector<128x128xbf16>
    %c6 = arith.constant 6 : index
    %c0_52 = arith.constant 0 : index
    %c0_53 = arith.constant 0 : index
    %98 = vector.load %arg7[%c6, %c0_52, %c0_53] : memref<9x128x128xbf16, #tpu.memory_space<vmem>>, vector<1x128x128xbf16>
    %99 = vector.shape_cast %98 : vector<1x128x128xbf16> to vector<128x128xbf16>
    %cst_54 = arith.constant dense<0.000000e+00> : vector<128x128xf32>
    %100 = tpu.matmul %97, %99, %cst_54 {dimension_numbers = #tpu.dot_dimension_numbers<[1], [0], [0], [1], [0, 0, 1, 1], [], []>} : vector<128x128xbf16>, vector<128x128xbf16>, vector<128x128xf32> -> vector<128x128xf32>
    %101 = arith.addf %94, %100 : vector<128x128xf32>
    %102 = vector.extract_strided_slice %51 {offsets = [2, 1, 0], sizes = [8, 16, 128], strides = [1, 1, 1]} : vector<10x18x128xf32> to vector<8x16x128xf32>
    %103 = vector.shape_cast %102 : vector<8x16x128xf32> to vector<128x128xf32>
    %104 = arith.truncf %103 : vector<128x128xf32> to vector<128x128xbf16>
    %c7 = arith.constant 7 : index
    %c0_55 = arith.constant 0 : index
    %c0_56 = arith.constant 0 : index
    %105 = vector.load %arg7[%c7, %c0_55, %c0_56] : memref<9x128x128xbf16, #tpu.memory_space<vmem>>, vector<1x128x128xbf16>
    %106 = vector.shape_cast %105 : vector<1x128x128xbf16> to vector<128x128xbf16>
    %cst_57 = arith.constant dense<0.000000e+00> : vector<128x128xf32>
    %107 = tpu.matmul %104, %106, %cst_57 {dimension_numbers = #tpu.dot_dimension_numbers<[1], [0], [0], [1], [0, 0, 1, 1], [], []>} : vector<128x128xbf16>, vector<128x128xbf16>, vector<128x128xf32> -> vector<128x128xf32>
    %108 = arith.addf %101, %107 : vector<128x128xf32>
    %109 = vector.extract_strided_slice %51 {offsets = [2, 2, 0], sizes = [8, 16, 128], strides = [1, 1, 1]} : vector<10x18x128xf32> to vector<8x16x128xf32>
    %110 = vector.shape_cast %109 : vector<8x16x128xf32> to vector<128x128xf32>
    %111 = arith.truncf %110 : vector<128x128xf32> to vector<128x128xbf16>
    %c8 = arith.constant 8 : index
    %c0_58 = arith.constant 0 : index
    %c0_59 = arith.constant 0 : index
    %112 = vector.load %arg7[%c8, %c0_58, %c0_59] : memref<9x128x128xbf16, #tpu.memory_space<vmem>>, vector<1x128x128xbf16>
    %113 = vector.shape_cast %112 : vector<1x128x128xbf16> to vector<128x128xbf16>
    %cst_60 = arith.constant dense<0.000000e+00> : vector<128x128xf32>
    %114 = tpu.matmul %111, %113, %cst_60 {dimension_numbers = #tpu.dot_dimension_numbers<[1], [0], [0], [1], [0, 0, 1, 1], [], []>} : vector<128x128xbf16>, vector<128x128xbf16>, vector<128x128xf32> -> vector<128x128xf32>
    %115 = arith.addf %108, %114 : vector<128x128xf32>
    %c0_61 = arith.constant 0 : index
    %c0_62 = arith.constant 0 : index
    %116 = vector.load %arg8[%c0_61, %c0_62] : memref<1x128xf32, #tpu.memory_space<vmem>>, vector<1x128xf32>
    %117 = vector.broadcast %116 : vector<1x128xf32> to vector<128x128xf32>
    %118 = arith.addf %115, %117 : vector<128x128xf32>
    %cst_63 = arith.constant 0.000000e+00 : f32
    %119 = vector.broadcast %cst_63 : f32 to vector<128x128xf32>
    %120 = arith.cmpf ogt, %118, %119 : vector<128x128xf32>
    %cst_64 = arith.constant 0.00999999977 : f32
    %121 = vector.broadcast %cst_64 : f32 to vector<128x128xf32>
    %122 = arith.mulf %121, %118 : vector<128x128xf32>
    %123 = arith.select %120, %118, %122 : vector<128x128xi1>, vector<128x128xf32>
    %124 = arith.extf %1 : vector<128x128xbf16> to vector<128x128xf32>
    %125 = arith.addf %123, %124 : vector<128x128xf32>
    %126 = vector.shape_cast %125 : vector<128x128xf32> to vector<1x8x16x128xf32>
    %c0_65 = arith.constant 0 : index
    %c0_66 = arith.constant 0 : index
    %c0_67 = arith.constant 0 : index
    %c0_68 = arith.constant 0 : index
    %127 = vector.load %arg9[%c0_65, %c0_66, %c0_67, %c0_68] : memref<1x8x16x128xf32, #tpu.memory_space<vmem>>, vector<1x8x16x128xf32>
    tpu.vector_store %arg9[%c0_65, %c0_66, %c0_67, %c0_68], %126 {strides = array<i32>} : memref<1x8x16x128xf32, #tpu.memory_space<vmem>>, vector<1x8x16x128xf32>,
    return
  }
  func.func @transform_0(%arg0: i32, %arg1: i32) -> (i32, i32, i32, i32) {
    %c8_i32 = arith.constant 8 : i32
    %0 = arith.muli %arg1, %c8_i32 : i32
    %c1_i32 = arith.constant 1 : i32
    %1 = arith.subi %0, %c1_i32 : i32
    %c0_i32 = arith.constant 0 : i32
    %2 = arith.maxsi %1, %c0_i32 : i32
    %c0_i32_0 = arith.constant 0 : i32
    %c0_i32_1 = arith.constant 0 : i32
    %c0_i32_2 = arith.constant 0 : i32
    return %arg0, %2, %c0_i32_0, %c0_i32_1 : i32, i32, i32, i32
  }
  func.func @transform_1(%arg0: i32, %arg1: i32) -> (i32, i32, i32, i32) {
    %c0_i32 = arith.constant 0 : i32
    %c0_i32_0 = arith.constant 0 : i32
    %c0_i32_1 = arith.constant 0 : i32
    return %arg0, %arg1, %c0_i32, %c0_i32_0 : i32, i32, i32, i32
  }
  func.func @transform_2(%arg0: i32, %arg1: i32) -> (i32, i32, i32, i32) {
    %c1_i32 = arith.constant 1 : i32
    %0 = arith.addi %arg1, %c1_i32 : i32
    %c8_i32 = arith.constant 8 : i32
    %1 = arith.muli %0, %c8_i32 : i32
    %c15_i32 = arith.constant 15 : i32
    %2 = arith.minsi %1, %c15_i32 : i32
    %c0_i32 = arith.constant 0 : i32
    %c0_i32_0 = arith.constant 0 : i32
    %c0_i32_1 = arith.constant 0 : i32
    return %arg0, %2, %c0_i32, %c0_i32_0 : i32, i32, i32, i32
  }
  func.func @transform_3(%arg0: i32, %arg1: i32) -> (i32, i32) {
    %c0_i32 = arith.constant 0 : i32
    %c0_i32_0 = arith.constant 0 : i32
    %c0_i32_1 = arith.constant 0 : i32
    return %c0_i32, %c0_i32_0 : i32, i32
  }
  func.func @transform_4(%arg0: i32, %arg1: i32) -> (i32, i32) {
    %c0_i32 = arith.constant 0 : i32
    %c0_i32_0 = arith.constant 0 : i32
    %c0_i32_1 = arith.constant 0 : i32
    return %c0_i32, %c0_i32_0 : i32, i32
  }
  func.func @transform_5(%arg0: i32, %arg1: i32) -> (i32, i32, i32) {
    %c0_i32 = arith.constant 0 : i32
    %c0_i32_0 = arith.constant 0 : i32
    %c0_i32_1 = arith.constant 0 : i32
    %c0_i32_2 = arith.constant 0 : i32
    return %c0_i32, %c0_i32_0, %c0_i32_1 : i32, i32, i32
  }
  func.func @transform_6(%arg0: i32, %arg1: i32) -> (i32, i32) {
    %c0_i32 = arith.constant 0 : i32
    %c0_i32_0 = arith.constant 0 : i32
    %c0_i32_1 = arith.constant 0 : i32
    return %c0_i32, %c0_i32_0 : i32, i32
  }
  func.func @transform_7(%arg0: i32, %arg1: i32) -> (i32, i32, i32, i32) {
    %c0_i32 = arith.constant 0 : i32
    %c0_i32_0 = arith.constant 0 : i32
    %c0_i32_1 = arith.constant 0 : i32
    return %arg0, %arg1, %c0_i32, %c0_i32_0 : i32, i32, i32, i32
  }
}

</mosaic_0001>

<bundles_post_ra>
// kernel: tpu_custom_call.1
= control target key start
LH: loop header
LB: loop body
LE: loop exit
PB: predicated region body
PF: predicated region fallthrough
CT: control target
= control target key end

     0   :  { %s5700_s0 = inlined_call_operand.hbm [shape: bf16[2,16,16,128], index: 0, kind: input, shape index: {}]   ;;  %s5701_s1 = inlined_call_operand.hbm [shape: bf16[2,16,16,128], index: 1, kind: input, shape index: {}]   ;;  %s5702_s2 = inlined_call_operand.hbm [shape: bf16[2,16,16,128], index: 2, kind: input, shape index: {}]   ;;  %s5703_s3 = inlined_call_operand.hbm [shape: bf16[128,128], index: 3, kind: input, shape index: {}]   ;;  %s5704_s4 = inlined_call_operand.vmem [shape: f32[1,128], index: 4, kind: input, shape index: {}]   ;;  %s5705_s5 = inlined_call_operand.hbm [shape: bf16[9,128,128], index: 5, kind: input, shape index: {}]   ;;  %s5706_s6 = inlined_call_operand.vmem [shape: f32[1,128], index: 6, kind: input, shape index: {}]   ;;  %s5707_s7 = inlined_call_operand.hbm [shape: f32[2,16,16,128], index: 7, kind: output, shape index: {}]  }
   0x1   :  { %5739 = sst [smem:[#allocation32_spill]] %s5701_s1 }
   0x2   :  { %5740 = sst [smem:[#allocation33_spill]] %s5702_s2 }
   0x3   :  { %5741 = sst [smem:[#allocation34_spill]] %s5703_s3 }
   0x4   :  { %5742 = sst [smem:[#allocation35_spill]] %s5704_s4 }
   0x5   :  { %5743 = sst [smem:[#allocation36_spill]] %s5705_s5 }
   0x6   :  { %5744 = sst [smem:[#allocation37_spill]] %s5706_s6 }
   0x7   :  { %5745 = sst [smem:[#allocation38_spill]] %s5707_s7 }
   0x8   :  { %12 = vsyncpa [#allocation3], 0 }
   0x9   :  { %14 = vsyncpa [#allocation3 + $0x1], 0 }
   0xa   :  { %15 = vsyncpa [#allocation6], 0 }
   0xb   :  { %17 = vsyncpa [#allocation6 + $0x1], 0 }
   0xc   :  { %18 = vsyncpa [#allocation9], 0 }
   0xd   :  { %19 = vsyncpa [#allocation4], 0 }
   0xe   :  { %21 = vsyncpa [#allocation4 + $0x1], 0  ;;  %s4556_s24 = smov 0   ;;  %s4558_s25 = smov 0  }
   0xf   :  { %s4560_s26 = smov 0   ;;  %s4562_s27 = smov 0  }
  0x10   :  { %s4564_s28 = smov 0   ;;  %s4566_s29 = smov 0  }
  0x11   :  { %s4568_s30 = smov 0   ;;  %s4570_s8 = smov 0  }
  0x12   :  { %s4572_s9 = smov 0   ;;  %s4574_s10 = smov 0  }
  0x13   :  { %s4576_s11 = smov 0   ;;  %s4578_s12 = smov 0  }
  0x14   :  { %s4580_s13 = smov 0   ;;  %s4582_s14 = smov 0  }
  0x15 LB: > { %5746 = sst [smem:[#allocation17_spill]] %s4461_s27  ;;  %s4627_s15 = sadd.s32 4294967295, %s4501_s14   ;;  %s4501_s14 = sphi %s4582_s14, %s27_s14   ;;  %s4497_s13 = sphi %s4580_s13, %s5840_s13   ;;  %s4493_s12 = sphi %s4578_s12, %s5850_s12   ;;  %s4489_s11 = sphi %s4576_s11, %s5849_s11   ;;  %s4485_s10 = sphi %s4574_s10, %s5837_s10   ;;  %s4481_s9 = sphi %s4572_s9, %s5848_s9   ;;  %s4477_s8 = sphi %s4570_s8, %s5847_s8   ;;  %s4473_s30 = sphi %s4568_s30, %s5846_s30   ;;  %s4469_s29 = sphi %s4566_s29, %s5845_s29   ;;  %s4465_s28 = sphi %s4564_s28, %s5844_s28   ;;  %s4461_s27 = sphi %s4562_s27, %s5834_s27   ;;  %s4457_s26 = sphi %s4560_s26, %s5843_s26   ;;  %s4453_s25 = sphi %s4558_s25, %s5842_s25   ;;  %s4449_s24 = sphi %s4556_s24, %s5841_s24  }
  0x16   : > { %5747 = sst [smem:[#allocation18_spill]] %s4465_s28  ;;  %p3031_p0 = scmp.ge.s32.totalorder %s4501_s14, 1 }
  0x17   : > { %5748 = sst [smem:[#allocation19_spill]] %s4477_s8  ;;  %p5709_p1 = scmp.eq.s32.totalorder %s4627_s15, 0 }
  0x18   : > { %5749 = sst [smem:[#allocation20_spill]] %s4485_s10  ;;  %p256_p3 = scmp.lt.s32.totalorder %s4501_s14, 5 }
  0x19   : > { %5750 = sst [smem:[#allocation21_spill]] %s4489_s11  ;;  %s4503_s17 = smov [#allocation8]  }
  0x1a   : > { %5751 = sst [smem:[#allocation22_spill]] %s4493_s12  ;;  %p4633_p4 = pnand %p3031_p0, %p256_p3 }
  0x1b   : > { %5752 = sst [smem:[#allocation23_spill]] %s4497_s13  ;;  %s268_s18 = sshll.u32 %s4503_s17, 4  ;;  %s269_s18 = int_to_ptr.vmem [resolvable:$true] %s268_s18 }
  0x1c   : > { %s5753_s16 = scalar_select %p4633_p4, 1, 0 }
  0x1d   : > { %p3943_p5 = pneg %p4633_p4  ;;  %s5756_s3 = sld [smem:[#allocation34_spill]] }
  0x1e   : > { %5754 = sst [smem:[#allocation24_spill]] %s5753_s16 }
  0x1f   : > { %p4641_p6 = pnand %p3943_p5, %p5709_p1 }
  0x21   : > { %p5727_p8 = pneg %p4641_p6 }
  0x23   : > { %s4197_s22 = scalar_lea.hbm %s5756_s3, 1024 }
  0x24   : > { %p4198_p7 = scmp.ne.s32.totalorder %s5756_s3, %s4197_s22  ;;  %p4204_p11 = scmp.lt.u32.totalorder %s4197_s22, %s5756_s3 }
  0x26   : > { %p4200_p9 = pnand %p5727_p8, %p4198_p7 }
  0x28   : > { %p4201_p10 = pneg %p4200_p9 }
  0x2a   : > { %p4206_p12 = pnand %p4204_p11, %p4201_p10 }
  0x2c   : > { %4209 = shalt.err (!%p4206_p12)
}
  0x2d   : > { %s4210_s20 = scalar_lea.vmem %s269_s18, 1024  ;;  %p4218_p5 = scmp.lt.s32.totalorder %s269_s18, %s269_s18 }
  0x2e   : > { %p4211_p13 = scmp.ne.s32.totalorder %s269_s18, %s4210_s20  ;;  %p4219_p1 = scmp.lt.s32.totalorder %s4210_s20, %s4210_s20 }
  0x30   : > { %p4213_p0 = pnand %p4211_p13, %p5727_p8  ;;  %p4220_p2 = por %p4219_p1, %p4218_p5 }
  0x32   : > { %p4214_p3 = pneg %p4213_p0 }
  0x34   : > { %p4221_p4 = pnand %p4220_p2, %p4214_p3 }
  0x36   : > { %4224 = shalt.err (!%p4221_p4)
}
  0x37   : > { %s5711_s7 = smov 64   ;;  %s5713_s11 = smov 4  }
  0x38   : > { %3946 = dma.hbm_to_vmem [thread:$0]  (!%p4641_p6), %s5756_s3, 1024, %s269_s18, [#allocation9], %s5711_s7, %s5711_s7, %s5713_s11  }
  0x39   : > { %s3024_s23 = sadd.s32 4294967294, %s4501_s14   ;;  %s36_s17 = sadd.s32 1, %s4493_s12 }
  0x3a   : > { %p37_p1 = scmp.ge.s32.totalorder %s36_s17, 2  ;;  %s39_s20 = sadd.s32 1, %s4497_s13 }
  0x3b   : > { %p5726_p2 = scmp.eq.s32.totalorder %s4501_s14, 0  ;;  %p91_p4 = scmp.ne.s32.totalorder %s4469_s29, %s4465_s28 }
  0x3c   : > { %s5852_s17 = smov (%p37_p1, %s36_s17), 0  ;;  %s5854_s20 = smov (!%p37_p1, %s39_s20), %s4497_s13 }
  0x3d   : > { %5757 = sst [smem:[#allocation25_spill]] %s5852_s17  ;;  %p97_p7 = scmp.ne.s32.totalorder %s4465_s28, %s4461_s27 }
  0x3e   : > { %p249_p9 = scmp.eq.s32.totalorder %s3024_s23, 3  ;;  %p4688_p10 = por %p91_p4, %p5726_p2 }
  0x3f   : > { %p5759_p11 = scmp.eq.s32.totalorder %s4627_s15, 3  ;;  %p5762_p13 = scmp.eq.s32.totalorder %s4627_s15, 0 }
  0x40   : > { %p4704_p3 = por %p249_p9, %p97_p7  ;;  %p5725_p5 = scmp.lt.s32.totalorder %s4501_s14, 4 }
  0x41   : > { %p4694_p12 = por %p5759_p11, %p91_p4  ;;  %p4700_p0 = por %p97_p7, %p5762_p13 }
  0x42   : > { %s5765_s6 = scalar_select %p4704_p3, 1, 0 }
  0x43   : > { %s5760_s21 = scalar_select %p4694_p12, 1, 0 }
  0x44   : > { %s5763_s22 = scalar_select %p4700_p0, 1, 0 }
  0x45   : > { %5761 = sst [smem:[#allocation26_spill]] %s5760_s21  ;;  %s4710_s23 = sshll.u32 %s4497_s13, 5 }
  0x46   : > { %5764 = sst [smem:[#allocation27_spill]] %s5763_s22  ;;  %s328_s4 = sand.u32 1, %s4501_s14  }
  0x47   : > { %5766 = sst [smem:[#allocation28_spill]] %s5765_s6  ;;  %s330_s7 = sand.u32 1, %s4469_s29  }
  0x48   : > { %s3041_s11 = sshll.u32 %s330_s7, 6  ;;  %s3257_s3 = sshll.u32 %s4493_s12, 4 }
  0x49   : > { %s339_s27 = sadd.s32 %s3257_s3, %s4710_s23  ;;  %s332_s10 = scalar_lea.vmem [#allocation5], %s3041_s11 }
  0x4a   : > { %s342_s21 = sshll.u32 %s332_s10, 4  ;;  %s3045_s28 = sshll.u32 %s339_s27, 6  ;;  %s4716_s21 = int_to_ptr.vmem [resolvable:$true] %s342_s21 }
  0x4b   : > { %s5767_s1 = sld [smem:[#allocation32_spill]]  ;;  %p4727_p1 = pnand %p5725_p5, %p4688_p10 }
  0x4c   : > { %s4506_s3 = smov [#allocation10]   ;;  %s4733_s10 = scalar_lea.sflag [#allocation6], %s328_s4 }
  0x4d   : > { %s4731_s27 = sshll.u32 %s4506_s3, 4  ;;  %5769 = sst [smem:[#allocation29_spill]] %s4733_s10  ;;  %s285_s27 = int_to_ptr.vmem [resolvable:$true] %s4731_s27 }
  0x4e   : > { %p4227_p7 = pneg %p4727_p1 }
  0x51   : > { %s4721_s2 = scalar_lea.hbm %s5767_s1, %s3045_s28  ;;  %s4230_s18 = scalar_lea.hbm %s5767_s1, 4096 }
  0x52   : > { %s4225_s16 = scalar_lea.hbm %s4721_s2, 1024  ;;  %p4231_p10 = scmp.lt.u32.totalorder %s4721_s2, %s5767_s1 }
  0x53   : > { %p4226_p4 = scmp.ne.s32.totalorder %s4721_s2, %s4225_s16  ;;  %p4232_p13 = scmp.lt.u32.totalorder %s4230_s18, %s4225_s16 }
  0x54   : > { %p4234_p2 = scmp.lt.u32.totalorder %s4225_s16, %s4721_s2 }
  0x55   : > { %p4228_p9 = pnand %p4227_p7, %p4226_p4  ;;  %p4233_p5 = por %p4232_p13, %p4231_p10 }
  0x57   : > { %p4229_p11 = pneg %p4228_p9  ;;  %p4235_p8 = por %p4234_p2, %p4233_p5 }
  0x59   : > { %p4236_p3 = pnand %p4235_p8, %p4229_p11 }
  0x5b   : > { %4239 = shalt.err (!%p4236_p3)
}
  0x5c   : > { %s4240_s4 = scalar_lea.vmem %s4716_s21, 1024  ;;  %s4507_s3 = smov [#allocation5]  }
  0x5d   : > { %p4241_p4 = scmp.ne.s32.totalorder %s4716_s21, %s4240_s4  ;;  %s4245_s28 = sshll.u32 %s4507_s3, 4  ;;  %s4246_s28 = int_to_ptr.vmem [resolvable:$false] %s4245_s28 }
  0x5e   : > { %s4247_s6 = scalar_lea.vmem %s4246_s28, 2048  ;;  %p4248_p0 = scmp.lt.s32.totalorder %s4716_s21, %s4246_s28 }
  0x5f   : > { %p4243_p9 = pnand %p4241_p4, %p4227_p7  ;;  %p4249_p10 = scmp.lt.s32.totalorder %s4247_s6, %s4240_s4 }
  0x61   : > { %p4244_p12 = pneg %p4243_p9  ;;  %p4250_p13 = por %p4249_p10, %p4248_p0 }
  0x63   : > { %p4251_p2 = pnand %p4250_p13, %p4244_p12 }
  0x65   : > { %4254 = shalt.err (!%p4251_p2)
}
  0x66   : > { %s5770_s16 = smov 4   ;;  %s5771_s11 = smov 64  }
  0x67   : > { %3956 = dma.hbm_to_vmem [thread:$0]  (!%p4727_p1), %s4721_s2, 1024, %s4716_s21, %s4733_s10, %s5771_s11, %s5771_s11, %s5770_s16  }
  0x68   : > { %s5772_s5 = sld [smem:[#allocation36_spill]]  ;;  %p5773_p12 = pneg %p4641_p6 }
  0x6e   : > { %s4255_s3 = scalar_lea.hbm %s5772_s5, 9216 }
  0x6f   : > { %p4256_p8 = scmp.ne.s32.totalorder %s5772_s5, %s4255_s3  ;;  %p4262_p5 = scmp.lt.u32.totalorder %s4255_s3, %s5772_s5 }
  0x71   : > { %p4258_p0 = pnand %p4256_p8, %p5773_p12 }
  0x73   : > { %p4259_p3 = pneg %p4258_p0 }
  0x75   : > { %p4264_p7 = pnand %p4262_p5, %p4259_p3 }
  0x77   : > { %4267 = shalt.err (!%p4264_p7)
}
  0x78   : > { %s4268_s2 = scalar_lea.vmem %s285_s27, 9216  ;;  %p5774_p11 = pmov %p5773_p12 }
  0x79   : > { %p4269_p1 = scmp.ne.s32.totalorder %s285_s27, %s4268_s2  ;;  %p4276_p10 = scmp.lt.s32.totalorder %s285_s27, %s285_s27 }
  0x7a   : > { %p4277_p13 = scmp.lt.s32.totalorder %s4268_s2, %s4268_s2 }
  0x7b   : > { %p4271_p4 = pnand %p4269_p1, %p5774_p11 }
  0x7c   : > { %p4278_p2 = por %p4277_p13, %p4276_p10 }
  0x7d   : > { %p4272_p9 = pneg %p4271_p4 }
  0x7f   : > { %p4279_p8 = pnand %p4278_p2, %p4272_p9 }
  0x81   : > { %4282 = shalt.err (!%p4279_p8)
}
  0x82   : > { %3949 = dma.hbm_to_vmem [thread:$0]  (!%p4641_p6), %s5772_s5, 9216, %s285_s27, [#allocation9], %s5771_s11, %s5771_s11, %s5770_s16  }
  0x83   : > { %p41_p12 = scmp.ge.s32.totalorder %s5854_s20, 2  ;;  %s3025_s19 = sshll.u32 %s4493_s12, 3 }
  0x84   : > { %s3026_s22 = sadd.s32 4294967295, %s3025_s19  ;;  %s3027_s3 = sshll.u32 %s5852_s17, 3 }
  0x85   : > { %s5856_s20 = smov (%p41_p12, %s5854_s20), 0  ;;  %p45_p0 = scmp.gt.s32.totalorder %s3026_s22, 0 }
  0x86   : > { %5775 = sst [smem:[#allocation30_spill]] %s5856_s20  ;;  %s3028_s4 = sadd.s32 4294967295, %s3027_s3 }
  0x87   : > { %p49_p3 = scmp.gt.s32.totalorder %s3028_s4, 0  ;;  %s4796_s28 = ssub.s32 %s4497_s13, %s5856_s20 }
  0x88   : > { %s5858_s22 = smov (!%p45_p0, %s3026_s22), 0  ;;  %s56_s27 = sadd.s32 1, %s4481_s9 }
  0x89   : > { %s5860_s4 = smov (!%p49_p3, %s3028_s4), 0  ;;  %p63_p6 = scmp.ne.s32.totalorder %s4481_s9, %s4477_s8 }
  0x8a   : > { %s52_s7 = ssub.s32 %s5858_s22, %s5860_s4  ;;  %p69_p5 = scmp.ne.s32.totalorder %s4477_s8, %s4473_s30 }
  0x8b   : > { %s53_s6 = sor.u32 %s52_s7, %s4796_s28  ;;  %p5776_p7 = scmp.eq.s32.totalorder %s4501_s14, 0 }
  0x8c   : > { %p54_p11 = scmp.eq.s32.totalorder %s53_s6, 0  ;;  %p5778_p4 = scmp.eq.s32.totalorder %s4627_s15, 0 }
  0x8d   : > { %p4806_p1 = por %p5776_p7, %p63_p6  ;;  %s5781_s18 = ssub.s32 %s4493_s12, %s5852_s17 }
  0x8e   : > { %p4812_p9 = por %p5778_p4, %p69_p5  ;;  %s81_s1 = sor.u32 %s5781_s18, %s4796_s28 }
  0x8f   : > { %s4820_s5 = sadd.s32 8, %s3025_s19  ;;  %p82_p10 = scmp.eq.s32.totalorder %s81_s1, 0 }
  0x90   : > { %s5779_s21 = scalar_select %p4812_p9, 1, 0 }
  0x91   : > { %s4823_s30 = scalar_select %p54_p11, %s4481_s9, %s56_s27  }
  0x92   : > { %5780 = sst [smem:[#allocation31_spill]] %s5779_s21  ;;  %s4826_s4 = sadd.s32 8, %s3027_s3 }
  0x93   : > { %s301_s7 = sand.u32 1, %s4481_s9   ;;  %s5782_s6 = sadd.s32 1, %s4469_s29 }
  0x94   : > { %s4832_s20 = scalar_select %p82_p10, %s4469_s29, %s5782_s6  }
  0x95   : > { %s3035_s13 = sshll.u32 %s301_s7, 3  ;;  %s3038_s17 = sshll.u32 %s5858_s22, 1 }
  0x96   : > { %s315_s18 = sadd.s32 %s4710_s23, %s3038_s17  ;;  %s305_s12 = scalar_lea.vmem [#allocation2], %s3035_s13 }
  0x97   : > { %s3040_s19 = sshll.u32 %s315_s18, 6  ;;  %s318_s21 = sshll.u32 %s305_s12, 4  ;;  %s4841_s21 = int_to_ptr.vmem [resolvable:$true] %s318_s21 }
  0x98   : > { %s4839_s27 = scalar_lea.hbm %s5700_s0, %s3040_s19  ;;  %p5783_p8 = scmp.lt.s32.totalorder %s4501_s14, 4 }
  0x99   : > { %s4851_s12 = scalar_lea.sflag [#allocation3], %s301_s7  ;;  %s4283_s13 = scalar_lea.hbm %s4839_s27, 128 }
  0x9a   : > { %p4847_p12 = pnand %p5783_p8, %p4806_p1  ;;  %p4284_p0 = scmp.ne.s32.totalorder %s4839_s27, %s4283_s13 }
  0x9b   : > { %s4288_s10 = scalar_lea.hbm %s5700_s0, 4096  ;;  %p4289_p7 = scmp.lt.u32.totalorder %s4839_s27, %s5700_s0 }
  0x9c   : > { %p4285_p3 = pneg %p4847_p12  ;;  %p4290_p1 = scmp.lt.u32.totalorder %s4288_s10, %s4283_s13 }
  0x9d   : > { %p4292_p4 = scmp.lt.u32.totalorder %s4283_s13, %s4839_s27 }
  0x9e   : > { %p4286_p6 = pnand %p4285_p3, %p4284_p0  ;;  %p4291_p11 = por %p4290_p1, %p4289_p7 }
  0xa0   : > { %p4287_p5 = pneg %p4286_p6  ;;  %p4293_p10 = por %p4292_p4, %p4291_p11 }
  0xa2   : > { %p4294_p8 = pnand %p4293_p10, %p4287_p5 }
  0xa4   : > { %4297 = shalt.err (!%p4294_p8)
}
  0xa5   : > { %s4298_s2 = scalar_lea.vmem %s4841_s21, 128  ;;  %s4508_s7 = smov [#allocation2]  }
  0xa6   : > { %p4299_p0 = scmp.ne.s32.totalorder %s4841_s21, %s4298_s2  ;;  %s4303_s6 = sshll.u32 %s4508_s7, 4  ;;  %s4304_s6 = int_to_ptr.vmem [resolvable:$false] %s4303_s6 }
  0xa7   : > { %s4305_s18 = scalar_lea.vmem %s4304_s6, 256  ;;  %p4306_p13 = scmp.lt.s32.totalorder %s4841_s21, %s4304_s6 }
  0xa8   : > { %p4301_p6 = pnand %p4299_p0, %p4285_p3  ;;  %p4307_p7 = scmp.lt.s32.totalorder %s4305_s18, %s4298_s2 }
  0xaa   : > { %p4302_p2 = pneg %p4301_p6  ;;  %p4308_p1 = por %p4307_p7, %p4306_p13 }
  0xac   : > { %p4309_p11 = pnand %p4308_p1, %p4302_p2 }
  0xae   : > { %4312 = shalt.err (!%p4309_p11)
}
  0xaf   : > { %3953 = dma.hbm_to_vmem [thread:$0]  (!%p4847_p12), %s4839_s27, 128, %s4841_s21, %s4851_s12, %s5771_s11, %s5771_s11, %s5770_s16  }
  0xb0   : > { %p5785_p13 = scmp.lt.s32.totalorder %s4820_s5, 15  ;;  %p5786_p2 = scmp.lt.s32.totalorder %s4826_s4, 15 }
  0xb1   : > { %s120_s19 = sadd.s32 1, %s4457_s26  ;;  %p127_p3 = scmp.ne.s32.totalorder %s4457_s26, %s4453_s25 }
  0xb2   : > { %s5862_s5 = smov (!%p5785_p13, %s4820_s5), 15  ;;  %s5864_s4 = smov (!%p5786_p2, %s4826_s4), 15 }
  0xb3   : > { %s116_s1 = ssub.s32 %s5862_s5, %s5864_s4  ;;  %p133_p5 = scmp.ne.s32.totalorder %s4453_s25, %s4449_s24 }
  0xb4   : > { %s117_s13 = sor.u32 %s116_s1, %s4796_s28  ;;  %p5787_p4 = scmp.eq.s32.totalorder %s4501_s14, 0 }
  0xb5   : > { %p118_p8 = scmp.eq.s32.totalorder %s117_s13, 0  ;;  %p5789_p0 = scmp.eq.s32.totalorder %s4627_s15, 0 }
  0xb6   : > { %p4896_p10 = por %p127_p3, %p5787_p4  ;;  %s354_s27 = sand.u32 1, %s4457_s26  }
  0xb7   : > { %p4902_p6 = por %p133_p5, %p5789_p0  ;;  %s3048_s12 = sshll.u32 %s5862_s5, 1 }
  0xb8   : > { %s4908_s17 = scalar_select %p118_p8, %s4457_s26, %s120_s19  }
  0xb9   : > { %s5790_s21 = scalar_select %p4902_p6, 1, 0 }
  0xba   : > { %s3046_s4 = sshll.u32 %s354_s27, 3  ;;  %s366_s10 = sadd.s32 %s3048_s12, %s4710_s23 }
  0xbb   : > { %s3050_s24 = sshll.u32 %s366_s10, 6  ;;  %s5791_s3 = sld [smem:[#allocation33_spill]] }
  0xbc   : > { %s356_s7 = scalar_lea.vmem [#allocation7], %s3046_s4  ;;  %p5792_p12 = scmp.lt.s32.totalorder %s4501_s14, 4 }
  0xbd   : > { %s369_s6 = sshll.u32 %s356_s7, 4  ;;  %s4916_s6 = int_to_ptr.vmem [resolvable:$true] %s369_s6 }
  0xbe   : > { %p4922_p7 = pnand %p5792_p12, %p4896_p10 }
  0xc0   : > { %p4315_p11 = pneg %p4922_p7 }
  0xc1   : > { %s4914_s2 = scalar_lea.hbm %s5791_s3, %s3050_s24  ;;  %s4318_s1 = scalar_lea.hbm %s5791_s3, 4096 }
  0xc2   : > { %s4313_s23 = scalar_lea.hbm %s4914_s2, 128  ;;  %p4319_p3 = scmp.lt.u32.totalorder %s4914_s2, %s5791_s3 }
  0xc3   : > { %p4314_p1 = scmp.ne.s32.totalorder %s4914_s2, %s4313_s23  ;;  %p4320_p5 = scmp.lt.u32.totalorder %s4318_s1, %s4313_s23 }
  0xc4   : > { %p4322_p10 = scmp.lt.u32.totalorder %s4313_s23, %s4914_s2 }
  0xc5   : > { %p4316_p13 = pnand %p4315_p11, %p4314_p1  ;;  %p4321_p4 = por %p4320_p5, %p4319_p3 }
  0xc7   : > { %p4317_p2 = pneg %p4316_p13  ;;  %p4323_p8 = por %p4322_p10, %p4321_p4 }
  0xc9   : > { %p4324_p0 = pnand %p4323_p8, %p4317_p2 }
  0xcb   : > { %4327 = shalt.err (!%p4324_p0)
}
  0xcc   : > { %s4328_s27 = scalar_lea.vmem %s4916_s6, 128  ;;  %s4509_s12 = smov [#allocation7]  }
  0xcd   : > { %p4329_p12 = scmp.ne.s32.totalorder %s4916_s6, %s4328_s27  ;;  %s4333_s4 = sshll.u32 %s4509_s12, 4  ;;  %s4334_s4 = int_to_ptr.vmem [resolvable:$false] %s4333_s4 }
  0xce   : > { %s4335_s10 = scalar_lea.vmem %s4334_s4, 256  ;;  %p4336_p6 = scmp.lt.s32.totalorder %s4916_s6, %s4334_s4 }
  0xcf   : > { %p4331_p1 = pnand %p4329_p12, %p4315_p11  ;;  %p4337_p3 = scmp.lt.s32.totalorder %s4335_s10, %s4328_s27 }
  0xd1   : > { %p4332_p13 = pneg %p4331_p1  ;;  %p4338_p5 = por %p4337_p3, %p4336_p6 }
  0xd3   : > { %p4339_p4 = pnand %p4338_p5, %p4332_p13 }
  0xd5   : > { %4342 = shalt.err (!%p4339_p4)
}
  0xd6   : > { %s5794_s24 = sld [smem:[#allocation29_spill]]  ;;  %s5795_s28 = sld [smem:[#allocation24_spill]] }
  0xdc   : > { %3959 = dma.hbm_to_vmem [thread:$0]  (!%p4922_p7), %s4914_s2, 128, %s4916_s6, %s5794_s24, %s5771_s11, %s5771_s11, %s5770_s16  }
  0xdd   : > { %p5796_p11 = scmp.ne.s32.totalorder %s5795_s28, 0 }
  0xde   : > { %s5797_s22 = sld [smem:[#allocation19_spill]] (!%p5796_p11) }
  0xdf   : > { %381 = sbr.rel (%p5796_p11) target bundleno = 937 (0x3a9), region = 48 }
  0xe4   : > { %s383_s23 = sand.u32 (!%p5796_p11), 1, %s5797_s22  }
  0xe5   : > { %s4958_s18 = sshll.u32 (!%p5796_p11), %s383_s23, 3  ;;  %s384_s19 = scalar_lea.sflag (!%p5796_p11), [#allocation3], %s383_s23 }
  0xe6   : > { %s387_s1 = scalar_lea.vmem [#allocation2], %s4958_s18 }
  0xe7   : > { %4428 = dma.done.wait (%p4812_p9), %s384_s19, 128  }
  0xe8   : > { %4430 = vsyncadd (%p4812_p9), %s384_s19, 4294967168  ;;  %s5799_s5 = sld [smem:[#allocation18_spill]]  ;;  %s5800_s13 = sld [smem:[#allocation27_spill]] }
  0xe9   : > { %s392_s16 = sand.u32 1, %s4627_s15  }
  0xea   : > { %s393_s6 = scalar_lea.sflag [#allocation6], %s392_s16 }
  0xee   : > { %s4967_s11 = sand.u32 1, %s5799_s5   ;;  %p5801_p6 = scmp.ne.s32.totalorder %s5800_s13, 0 }
  0xef   : > { %s3053_s2 = sshll.u32 %s4967_s11, 6 }
  0xf0   : > { %s4970_s8 = scalar_lea.vmem [#allocation5], %s3053_s2 }
  0xf1   : > { %4432 = dma.done.wait (%p5801_p6), %s393_s6, 1024  }
  0xf2   : > { %4434 = vsyncadd (%p5801_p6), %s393_s6, 4294966272  ;;  %s403_s27 = sand.u32 1, %s4453_s25   ;;  %p5802_p9 = scmp.ne.s32.totalorder %s5790_s21, 0 }
  0xf3   : > { %s4977_s12 = sshll.u32 %s403_s27, 3 }
  0xf4   : > { %s405_s4 = scalar_lea.vmem [#allocation7], %s4977_s12 }
  0xf5   : > { %4436 = dma.done.wait (%p5802_p9), %s393_s6, 128  }
  0xf6   : > { %4438 = vsyncadd (%p5802_p9), %s393_s6, 4294967168  ;;  %p5803_p7 = scmp.eq.s32.totalorder %s4627_s15, 0 }
  0xf8   : > { %4440 = dma.done.wait (%p5803_p7), [#allocation9], 10240   ;;  %p5804_p2 = pmov %p5803_p7 }
  0xf9   : > { %v4988_v0 = vld [vmem:[#allocation8] sm:$0xff]   ;;  %v4990_v1 = vld [vmem:[#allocation8 + $0x8] sm:$0xff]   ;;  %v4995_v2 = vld [vmem:[#allocation8 + $0x10] sm:$0xff]   ;;  %v4510_v16 = vmov 0.0   ;;  %vm4511_vm0 = vmmov 0   ;;  %s5805_s15 = sld [smem:[#allocation20_spill]] }
  0xfa   : > { %4442 = vsyncadd (%p5804_p2), [#allocation9], 4294957056  ;;  %3439 = vmatprep.subr.bf16.mxu0 %v4988_v0  ;;  %v4999_v3 = vld [vmem:[#allocation8 + $0x18] sm:$0xff]   ;;  %v465_v4 = vld [vmem:[%s4970_s8] sm:$0xff]   ;;  %s5806_s24 = sld [smem:[#allocation35_spill]]  ;;  %vm887_vm3 = vcmask 1040384  }
  0xfb   : > { %3440 = vmatpush3.bf16.msra.mxu0 %v4988_v0  ;;  %3455 = vmatprep.mubr.bf16.mxu0 %v465_v4  ;;  %v5004_v5 = vld [vmem:[#allocation8 + $0x20] sm:$0xff]   ;;  %v4110_v7 = vld [vmem:[#allocation10 + $0xc8] sm:$0xff]   ;;  %v4111_v9 = vld [vmem:[#allocation10 + $0xd0] sm:$0xff]   ;;  %vm4512_vm11 = vmmov 1   ;;  %s3057_s5 = sshll.u32 %s4967_s11, 7  ;;  %s5825_s16 = sld [smem:[#allocation21_spill]] }
  0xfc   : > { %3441 = vmatprep.subr.bf16.mxu0 %v4990_v1  ;;  %v4109_v6 = vld [vmem:[#allocation10 + $0xc0] sm:$0xff]   ;;  %v5008_v8 = vld [vmem:[#allocation8 + $0x28] sm:$0xff]   ;;  %v5010_v10 = vld [vmem:[#allocation8 + $0x30] sm:$0xff]   ;;  %s5570_s13 = scalar_lea.vmem [#allocation11], %s3057_s5  ;;  %s5826_s12 = sld [smem:[#allocation26_spill]] }
  0xfd   : > { %3607 = vmatprep.subr.bf16.mxu1 %v4109_v6  ;;  %v4112_v11 = vld [vmem:[#allocation10 + $0xd8] sm:$0xff]   ;;  %v4113_v13 = vld [vmem:[#allocation10 + $0xe0] sm:$0xff]   ;;  %v471_v17 = vld [vmem:[%s4970_s8 + $0x18] sm:$0xff]   ;;  %s5827_s10 = sld [smem:[#allocation38_spill]] }
  0xfe   : > { %3608 = vmatpush3.bf16.msra.mxu1 %v4109_v6  ;;  %v5014_v12 = vld [vmem:[#allocation8 + $0x38] sm:$0xff]   ;;  %v469_v15 = vld [vmem:[%s4970_s8 + $0x10] sm:$0xff]   ;;  %v473_v18 = vld [vmem:[%s4970_s8 + $0x20] sm:$0xff]  }
  0xff   : > { %3442 = vmatpush3.bf16.msra.mxu0 %v4990_v1  ;;  %3609 = vmatprep.subr.bf16.mxu1 %v4110_v7  ;;  %v467_v14 = vld [vmem:[%s4970_s8 + $0x8] sm:$0xff]   ;;  %v477_v20 = vld [vmem:[%s4970_s8 + $0x30] sm:$0xff]   ;;  %v479_v21 = vld [vmem:[%s4970_s8 + $0x38] sm:$0xff]   ;;  %p800_p10 = scmp.gt.s32.totalorder %s5805_s15, 0  ;;  %p861_p8 = scmp.lt.s32.totalorder %s5805_s15, 1 }
 0x100   : > { %3443 = vmatprep.subr.bf16.mxu0 %v4995_v2  ;;  %v475_v19 = vld [vmem:[%s4970_s8 + $0x28] sm:$0xff]   ;;  %v4107_v22 = vld [vmem:[%s387_s1] sm:$0xff]   ;;  %v4115_v25 = vld [vmem:[#allocation10 + $0xf0] sm:$0xff]   ;;  %s5824_s1 = sld [smem:[#allocation37_spill]]  ;;  %s3260_s2 = sshll.u32 %s5805_s15, 4 }
 0x101   : > { %v4108_v23 = vld [vmem:[%s405_s4] sm:$0xff]   ;;  %v4114_v24 = vld [vmem:[#allocation10 + $0xe8] sm:$0xff]   ;;  %v5048_v27 = vld [vmem:[#allocation10 + $0x100] sm:$0xff]   ;;  %s801_s28 = scalar_select %p800_p10, 1, 0 }
 0x102   : > { %3610 = vmatpush3.bf16.msra.mxu1 %v4110_v7  ;;  %v4116_v26 = vld [vmem:[#allocation10 + $0xf8] sm:$0xff]   ;;  %v4119_v28 = vld [vmem:[#allocation10 + $0x40] sm:$0xff]   ;;  %v4121_v29 = vld [vmem:[#allocation10 + $0x48] sm:$0xff]   ;;  %s5385_s7 = scalar_select %p861_p8, 1, 0 }
 0x103   : > { %3444 = vmatpush3.bf16.msra.mxu0 %v4995_v2  ;;  %3611 = vmatprep.subr.bf16.mxu1 %v4111_v9  ;;  %v4123_v30 = vld [vmem:[#allocation10 + $0x50] sm:$0xff]   ;;  %v4125_v31 = vld [vmem:[#allocation10 + $0x58] sm:$0xff]   ;;  %v4127_v32 = vld [vmem:[#allocation10 + $0x60] sm:$0xff]   ;;  %s802_s22 = scvt.s32.f32 %s801_s28  ;;  %s3249_s6 = sshll.u32 %s5825_s16, 5 }
 0x104   : > { %3445 = vmatprep.subr.bf16.mxu0 %v4999_v3  ;;  %v4129_v33 = vld [vmem:[#allocation10 + $0x68] sm:$0xff]   ;;  %v4131_v34 = vld [vmem:[#allocation10 + $0x70] sm:$0xff]   ;;  %v4133_v35 = vld [vmem:[#allocation10 + $0x78] sm:$0xff]   ;;  %s863_s23 = scvt.s32.f32 %s5385_s7  ;;  %s2862_s27 = sadd.s32 %s3260_s2, %s3249_s6 }
 0x105   : > { %v5051_v36 = vld [vmem:[#allocation10] sm:$0xff]   ;;  %v5067_v59 = vstv %s802_s22  ;;  %vm3093_vm9 = vmneg %vm887_vm3  ;;  %v4128_v7 = vld [vmem:[#allocation10 + $0x130] sm:$0xff]   ;;  %s3250_s4 = sshll.u32 %s2862_s27, 7  ;;  %s5828_s22 = smov %s5827_s10 }
 0x106   : > { %3612 = vmatpush3.bf16.msra.mxu1 %v4111_v9  ;;  %v5058_v37 = vld [vmem:[%s5806_s24] ss:$0 sm:$0xff]  ;;  %vm5097_vm12 = vmpackc.low %vm4512_vm11, %vm3093_vm9  ;;  %vm1380_vm9 = vcmask 1045504   ;;  %s5620_s24 = scalar_lea.hbm %s5827_s10, %s3250_s4  ;;  %s2849_s28 = scalar_lea.sflag [#allocation4], %s4967_s11 }
 0x107   : > { %3446 = vmatpush3.bf16.msra.mxu0 %v4999_v3  ;;  %3613 = vmatprep.subr.bf16.mxu1 %v4112_v11  ;;  %p5829_p12 = scmp.ne.s32.totalorder %s5826_s12, 0 }
 0x108   : > { %3447 = vmatprep.subr.bf16.mxu0 %v5004_v5 }
 0x10a   : > { %3614 = vmatpush3.bf16.msra.mxu1 %v4112_v11 }
 0x10b   : > { %3448 = vmatpush3.bf16.msra.mxu0 %v5004_v5  ;;  %3615 = vmatprep.subr.bf16.mxu1 %v4113_v13 }
 0x10c   : > { %3449 = vmatprep.subr.bf16.mxu0 %v5008_v8 }
 0x10e   : > { %3616 = vmatpush3.bf16.msra.mxu1 %v4113_v13 }
 0x10f   : > { %3450 = vmatpush3.bf16.msra.mxu0 %v5008_v8  ;;  %3617 = vmatprep.subr.bf16.mxu1 %v4114_v24 }
 0x110   : > { %3451 = vmatprep.subr.bf16.mxu0 %v5010_v10 }
 0x112   : > { %3618 = vmatpush3.bf16.msra.mxu1 %v4114_v24 }
 0x113   : > { %3452 = vmatpush3.bf16.msra.mxu0 %v5010_v10  ;;  %3619 = vmatprep.subr.bf16.mxu1 %v4115_v25 }
 0x114   : > { %3453 = vmatprep.subr.bf16.mxu0 %v5014_v12 }
 0x116   : > { %3620 = vmatpush3.bf16.msra.mxu1 %v4115_v25 }
 0x117   : > { %3454 = vmatpush3.bf16.msra.mxu0 %v5014_v12  ;;  %3621 = vmatprep.subr.bf16.mxu1 %v4116_v26 }
 0x118   : > { %3471 = vmatprep.subr.bf16.mxu0 %v4510_v16 }
 0x11a   : > { %3456 = vmatmul.mubr.bf16.vlgmr.msra.gmra.mrb[0].mxu0 %v467_v14  ;;  %3622 = vmatpush3.bf16.msra.mxu1 %v4116_v26 }
 0x11b   : > { %3472 = vmatpush3.bf16.msra.mxu0 %v4988_v0  ;;  %3459 = vmatprep.mubr.bf16.mxu0 %v469_v15 }
 0x11c   : > { %3473 = vmatprep.subr.bf16.mxu0 %v4510_v16  ;;  %3639 = vmatprep.subr.bf16.mxu1 %v5048_v27 }
 0x11f   : > { %3474 = vmatpush3.bf16.msra.mxu0 %v4990_v1 }
 0x120   : > { %3475 = vmatprep.subr.bf16.mxu0 %v4510_v16 }
 0x122   : > { %3460 = vmatmul.mubr.bf16.gmra.mrb[4].mxu0 %v471_v17 }
 0x123   : > { %3476 = vmatpush3.bf16.msra.mxu0 %v4995_v2  ;;  %3463 = vmatprep.mubr.bf16.mxu0 %v473_v18 }
 0x124   : > { %3477 = vmatprep.subr.bf16.mxu0 %v4510_v16 }
 0x127   : > { %3478 = vmatpush3.bf16.msra.mxu0 %v4999_v3 }
 0x128   : > { %3479 = vmatprep.subr.bf16.mxu0 %v4510_v16 }
 0x12a   : > { %3464 = vmatmul.mubr.bf16.gmra.mrb[8].mxu0 %v475_v19 }
 0x12b   : > { %3480 = vmatpush3.bf16.msra.mxu0 %v5004_v5  ;;  %3467 = vmatprep.mubr.bf16.mxu0 %v477_v20 }
 0x12c   : > { %3481 = vmatprep.subr.bf16.mxu0 %v4510_v16 }
 0x12f   : > { %3482 = vmatpush3.bf16.msra.mxu0 %v5008_v8 }
 0x130   : > { %3483 = vmatprep.subr.bf16.mxu0 %v4510_v16 }
 0x132   : > { %3468 = vmatmul.mubr.bf16.gmra.mrb[12].mxu0 %v479_v21 }
 0x133   : > { %3484 = vmatpush3.bf16.msra.mxu0 %v5010_v10  ;;  %3487 = vmatprep.mubr.msk.bf16.mxu0 %vm4511_vm0, %v4510_v16 }
 0x134   : > { %3485 = vmatprep.subr.bf16.mxu0 %v4510_v16 }
 0x137   : > { %3486 = vmatpush3.bf16.msra.mxu0 %v5014_v12 }
 0x138   : > { %3491 = vmatprep.subr.bf16.mxu0 %v4510_v16 }
 0x13a   : > { %3488 = vmatmul.mubr.bf16.vlgmr.msra.gmra.mrb[16].mxu0 %v4107_v22 }
 0x13b   : > { %3492 = vmatpush3.bf16.msra.mxu0 %v4988_v0  ;;  %3507 = vmatprep.mubr.msk.bf16.mxu0 %vm4511_vm0, %v4510_v16 }
 0x13c   : > { %3493 = vmatprep.subr.bf16.mxu0 %v4510_v16 }
 0x13f   : > { %3494 = vmatpush3.bf16.msra.mxu0 %v4990_v1 }
 0x140   : > { %3495 = vmatprep.subr.bf16.mxu0 %v4510_v16 }
 0x143   : > { %3496 = vmatpush3.bf16.msra.mxu0 %v4995_v2 }
 0x144   : > { %3497 = vmatprep.subr.bf16.mxu0 %v4510_v16 }
 0x147   : > { %3498 = vmatpush3.bf16.msra.mxu0 %v4999_v3 }
 0x148   : > { %3499 = vmatprep.subr.bf16.mxu0 %v4510_v16 }
 0x14b   : > { %3500 = vmatpush3.bf16.msra.mxu0 %v5004_v5 }
 0x14c   : > { %3501 = vmatprep.subr.bf16.mxu0 %v4510_v16 }
 0x14f   : > { %3502 = vmatpush3.bf16.msra.mxu0 %v5008_v8 }
 0x150   : > { %3503 = vmatprep.subr.bf16.mxu0 %v4510_v16 }
 0x153   : > { %3504 = vmatpush3.bf16.msra.mxu0 %v5010_v10 }
 0x154   : > { %3505 = vmatprep.subr.bf16.mxu0 %v4510_v16 }
 0x157   : > { %3506 = vmatpush3.bf16.msra.mxu0 %v5014_v12 }
 0x158   : > { %3511 = vmatprep.subr.bf16.mxu0 %v4119_v28 }
 0x15a   : > { %3508 = vmatmul.mubr.bf16.vlgmr.msra.gmra.mrb[20].mxu0 %v4108_v23 }
 0x15b   : > { %3512 = vmatpush3.bf16.msra.mxu0 %v4119_v28  ;;  %v4177_v28 = vld [vmem:[#allocation10 + $0x220] sm:$0xff]  }
 0x15c   : > { %3513 = vmatprep.subr.bf16.mxu0 %v4121_v29 }
 0x15f   : > { %3514 = vmatpush3.bf16.msra.mxu0 %v4121_v29 }
 0x160   : > { %3515 = vmatprep.subr.bf16.mxu0 %v4123_v30 }
 0x163   : > { %3516 = vmatpush3.bf16.msra.mxu0 %v4123_v30 }
 0x164   : > { %3517 = vmatprep.subr.bf16.mxu0 %v4125_v31 }
 0x167   : > { %3518 = vmatpush3.bf16.msra.mxu0 %v4125_v31 }
 0x168   : > { %3519 = vmatprep.subr.bf16.mxu0 %v4127_v32 }
 0x16b   : > { %3520 = vmatpush3.bf16.msra.mxu0 %v4127_v32 }
 0x16c   : > { %3521 = vmatprep.subr.bf16.mxu0 %v4129_v33 }
 0x16f   : > { %3522 = vmatpush3.bf16.msra.mxu0 %v4129_v33 }
 0x170   : > { %3523 = vmatprep.subr.bf16.mxu0 %v4131_v34 }
 0x173   : > { %3524 = vmatpush3.bf16.msra.mxu0 %v4131_v34 }
 0x174   : > { %3525 = vmatprep.subr.bf16.mxu0 %v4133_v35 }
 0x177   : > { %3526 = vmatpush3.bf16.msra.mxu0 %v4133_v35 }
 0x178   : > { %3543 = vmatprep.subr.bf16.mxu0 %v5051_v36 }
 0x1ed   : > { %v3457_v38 = vpop.f32.mrb[0].mxu0 }
 0x1ee   : > { %v643_v39 = vadd.f32 %v3457_v38, %v5058_v37  ;;  %v634_v40 = vpop.f32.mrb[1].mxu0 }
 0x1ef   : > { %v635_v41 = vadd.f32 %v5058_v37, %v634_v40  ;;  %v3458_v42 = vpop.f32.mrb[2].mxu0 }
 0x1f0   : > { %vm699_vm1 = vcmp.gt.f32.partialorder %v643_v39, 0.0  ;;  %v715_v43 = vmul.f32 0.01, %v643_v39  ;;  %v646_v44 = vadd.f32 %v3458_v42, %v5058_v37  ;;  %v637_v45 = vpop.f32.mrb[3].mxu0  ;;  %v4118_v42 = vld [vmem:[#allocation10 + $0x108] sm:$0xff]  }
 0x1f1   : > { %vm697_vm2 = vcmp.gt.f32.partialorder %v635_v41, 0.0  ;;  %v713_v46 = vmul.f32 0.01, %v635_v41  ;;  %v638_v47 = vadd.f32 %v5058_v37, %v637_v45 }
 0x1f2   : > { %v731_v48 = vsel %vm699_vm1, %v643_v39, %v715_v43  ;;  %vm700_vm4 = vcmp.gt.f32.partialorder %v646_v44, 0.0  ;;  %v716_v49 = vmul.f32 0.01, %v646_v44  ;;  %vm1008_vm1 = vcmask 1046528  }
 0x1f3   : > { %v894_v50 = vrot.slane %v731_v48, 7  ;;  %v729_v51 = vsel %vm697_vm2, %v635_v41, %v713_v46  ;;  %vm698_vm5 = vcmp.gt.f32.partialorder %v638_v47, 0.0  ;;  %v714_v52 = vmul.f32 0.01, %v638_v47 }
 0x1f4   : > { %v891_v53 = vrot.slane %v729_v51, 7  ;;  %v732_v54 = vsel %vm700_vm4, %v646_v44, %v716_v49 }
 0x1f5   : > { %v5065_v55 = vsel %vm887_vm3, 0.0, %v894_v50  ;;  %v895_v56 = vrot.slane %v732_v54, 7  ;;  %v730_v57 = vsel %vm698_vm5, %v638_v47, %v714_v52  ;;  %v3461_v58 = vpop.f32.mrb[4].mxu0 }
 0x1f6   : > { %v1019_v60 = vrot.slane %v5065_v55, 1  ;;  %v5072_v62 = vsel %vm887_vm3, 0.0, %v891_v53  ;;  %v892_v63 = vrot.slane %v730_v57, 7  ;;  %v650_v0 = vpop.f32.mrb[5].mxu0  ;;  %v659_v2 = vadd.f32 %v3461_v58, %v5058_v37  ;;  %v4126_v57 = vld [vmem:[#allocation10 + $0x128] sm:$0xff]  }
 0x1f7   : > { %v5075_v1 = vsel %vm887_vm3, %v895_v56, 0.0  ;;  %v651_v3 = vadd.f32 %v5058_v37, %v650_v0  ;;  %v3462_v4 = vpop.f32.mrb[6].mxu0  ;;  %v5080_v5 = vsel %vm887_vm3, %v894_v50, %v895_v56 }
 0x1f8   : > { %v1022_v6 = vrot.slane %v5075_v1, 1  ;;  %v5085_v8 = vsel %vm887_vm3, %v892_v63, 0.0  ;;  %v662_v9 = vadd.f32 %v3462_v4, %v5058_v37  ;;  %v653_v10 = vpop.f32.mrb[7].mxu0  ;;  %vm703_vm6 = vcmp.gt.f32.partialorder %v659_v2, 0.0 }
 0x1f9   : > { %v1017_v11 = vrot.slane %v5085_v8, 1  ;;  %v719_v13 = vmul.f32 0.01, %v659_v2  ;;  %vm701_vm7 = vcmp.gt.f32.partialorder %v651_v3, 0.0  ;;  %v717_v14 = vmul.f32 0.01, %v651_v3 }
 0x1fa   : > { %vm704_vm8 = vcmp.gt.f32.partialorder %v662_v9, 0.0  ;;  %v720_v15 = vmul.f32 0.01, %v662_v9  ;;  %v654_v17 = vadd.f32 %v5058_v37, %v653_v10  ;;  %v5093_v18 = vsel %vm887_vm3, %v891_v53, %v892_v63  ;;  %v4120_v63 = vld [vmem:[#allocation10 + $0x110] sm:$0xff]  }
 0x1fb   : > { %v735_v16 = vsel %vm703_vm6, %v659_v2, %v719_v13  ;;  %v1020_v19 = vrot.slane %v5080_v5, 1  ;;  %v733_v21 = vsel %vm701_vm7, %v651_v3, %v717_v14  ;;  %v1015_v23 = vrot.slane %v5093_v18, 1 }
 0x1fc   : > { %v900_v20 = vrot.slane %v735_v16, 7  ;;  %v736_v22 = vsel %vm704_vm8, %v662_v9, %v720_v15  ;;  %v897_v24 = vrot.slane %v733_v21, 7  ;;  %vm702_vm10 = vcmp.gt.f32.partialorder %v654_v17, 0.0 }
 0x1fd   : > { %v901_v25 = vrot.slane %v736_v22, 7  ;;  %v718_v26 = vmul.f32 0.01, %v654_v17  ;;  %v3465_v29 = vpop.f32.mrb[8].mxu0  ;;  %v5105_v31 = vpack.c.bf16 %v5093_v18, %v891_v53  ;;  %v5109_v33 = vpack.c.bf16 %v5080_v5, %v894_v50 }
 0x1fe   : > { %v5102_v30 = vsel %vm887_vm3, 0.0, %v900_v20  ;;  %v666_v34 = vpop.f32.mrb[9].mxu0  ;;  %v5112_v35 = vsel %vm887_vm3, 0.0, %v897_v24  ;;  %v675_v46 = vadd.f32 %v3465_v29, %v5058_v37  ;;  %v4122_v29 = vld [vmem:[#allocation10 + $0x118] sm:$0xff]  }
 0x1ff   : > { %v5115_v38 = vsel %vm887_vm3, %v901_v25, 0.0  ;;  %v734_v39 = vsel %vm702_vm10, %v654_v17, %v718_v26  ;;  %v3466_v41 = vpop.f32.mrb[10].mxu0  ;;  %3623 = vmatprep.mubr.msk.bf16.mxu1 %vm5097_vm12, %v5105_v31  ;;  %v667_v48 = vadd.f32 %v5058_v37, %v666_v34  ;;  %v5131_v51 = vsel %vm887_vm3, %v900_v20, %v901_v25 }
 0x200   : > { %v1032_v43 = vrot.slane %v5115_v38, 1  ;;  %v898_v45 = vrot.slane %v734_v39, 7  ;;  %v669_v47 = vpop.f32.mrb[11].mxu0  ;;  %3624 = vmatmul.mubr.msk.bf16.vlgmr.msra.gmra.mrb[0].mxu1 %vm5097_vm12, %v5109_v33  ;;  %v678_v49 = vadd.f32 %v3466_v41, %v5058_v37  ;;  %vm707_vm13 = vcmp.gt.f32.partialorder %v675_v46, 0.0 }
 0x201   : > { %v670_v50 = vadd.f32 %v5058_v37, %v669_v47  ;;  %3640 = vmatpush3.bf16.msra.mxu1 %v5048_v27  ;;  %v723_v53 = vmul.f32 0.01, %v675_v46  ;;  %vm705_vm14 = vcmp.gt.f32.partialorder %v667_v48, 0.0  ;;  %v721_v58 = vmul.f32 0.01, %v667_v48 }
 0x202   : > { %v5134_v52 = vsel %vm887_vm3, %v898_v45, 0.0  ;;  %v5138_v54 = vsel %vm887_vm3, %v897_v24, %v898_v45  ;;  %3641 = vmatprep.subr.bf16.mxu1 %v4118_v42  ;;  %vm708_vm15 = vcmp.gt.f32.partialorder %v678_v49, 0.0  ;;  %v724_v2 = vmul.f32 0.01, %v678_v49 }
 0x203   : > { %v1027_v56 = vrot.slane %v5134_v52, 1  ;;  %v739_v0 = vsel %vm707_vm13, %v675_v46, %v723_v53  ;;  %vm706_vm0 = vcmp.gt.f32.partialorder %v670_v50, 0.0  ;;  %v737_v4 = vsel %vm705_vm14, %v667_v48, %v721_v58 }
 0x204   : > { %v906_v3 = vrot.slane %v739_v0, 7  ;;  %v722_v27 = vmul.f32 0.01, %v670_v50  ;;  %v5143_v9 = vpack.c.bf16 %v5138_v54, %v897_v24  ;;  %v903_v13 = vrot.slane %v737_v4, 7  ;;  %v4124_v4 = vld [vmem:[#allocation10 + $0x120] sm:$0xff]  }
 0x205   : > { %v3469_v10 = vpop.f32.mrb[12].mxu0  ;;  %v740_v14 = vsel %vm708_vm15, %v678_v49, %v724_v2  ;;  %3642 = vmatpush3.bf16.msra.mxu1 %v4118_v42  ;;  %v5146_v15 = vpack.c.bf16 %v5131_v51, %v900_v20 }
 0x206   : > { %v691_v16 = vadd.f32 %v3469_v10, %v5058_v37  ;;  %v682_v17 = vpop.f32.mrb[13].mxu0  ;;  %v5150_v21 = vsel %vm887_vm3, 0.0, %v906_v3  ;;  %v907_v22 = vrot.slane %v740_v14, 7  ;;  %v738_v25 = vsel %vm706_vm0, %v670_v50, %v722_v27  ;;  %3627 = vmatprep.mubr.msk.bf16.mxu1 %vm5097_vm12, %v5143_v9  ;;  %3643 = vmatprep.subr.bf16.mxu1 %v4120_v63 }
 0x207   : > { %v683_v24 = vadd.f32 %v5058_v37, %v682_v17  ;;  %v3470_v26 = vpop.f32.mrb[14].mxu0  ;;  %v5157_v20 = vsel %vm887_vm3, 0.0, %v903_v13  ;;  %v904_v34 = vrot.slane %v738_v25, 7 }
 0x208   : > { %vm711_vm2 = vcmp.gt.f32.partialorder %v691_v16, 0.0  ;;  %v727_v39 = vmul.f32 0.01, %v691_v16  ;;  %v685_v41 = vpop.f32.mrb[15].mxu0  ;;  %v5160_v42 = vsel %vm887_vm3, %v907_v22, 0.0  ;;  %3628 = vmatmul.mubr.msk.bf16.gmra.mrb[4].mxu1 %vm5097_vm12, %v5146_v15  ;;  %v694_v46 = vadd.f32 %v3470_v26, %v5058_v37 }
 0x209   : > { %vm709_vm4 = vcmp.gt.f32.partialorder %v683_v24, 0.0  ;;  %v725_v45 = vmul.f32 0.01, %v683_v24  ;;  %v1042_v47 = vrot.slane %v5160_v42, 1  ;;  %v5169_v49 = vsel %vm887_vm3, %v904_v34, 0.0  ;;  %3644 = vmatpush3.bf16.msra.mxu1 %v4120_v63 }
 0x20a   : > { %v743_v50 = vsel %vm711_vm2, %v691_v16, %v727_v39  ;;  %v1037_v53 = vrot.slane %v5169_v49, 1  ;;  %3645 = vmatprep.subr.bf16.mxu1 %v4122_v29  ;;  %vm712_vm5 = vcmp.gt.f32.partialorder %v694_v46, 0.0  ;;  %v728_v10 = vmul.f32 0.01, %v694_v46 }
 0x20b   : > { %v912_v0 = vrot.slane %v743_v50, 7  ;;  %v741_v2 = vsel %vm709_vm4, %v683_v24, %v725_v45  ;;  %v686_v14 = vadd.f32 %v5058_v37, %v685_v41  ;;  %v5178_v25 = vsel %vm887_vm3, %v903_v13, %v904_v34 }
 0x20c   : > { %v909_v27 = vrot.slane %v741_v2, 7  ;;  %v5181_v63 = vsel %vm887_vm3, %v906_v3, %v907_v22  ;;  %v1014_v26 = vrot.slane %v5072_v62, 1  ;;  %v744_v39 = vsel %vm712_vm5, %v694_v46, %v728_v10 }
 0x20d   : > { %v5175_v17 = vsel %vm887_vm3, 0.0, %v912_v0  ;;  %v787_v16 = vpop.f32.mrb[16].mxu0  ;;  %vm710_vm6 = vcmp.gt.f32.partialorder %v686_v14, 0.0  ;;  %v726_v45 = vmul.f32 0.01, %v686_v14  ;;  %3646 = vmatpush3.bf16.msra.mxu1 %v4122_v29  ;;  %v913_v50 = vrot.slane %v744_v39, 7 }
 0x20e   : > { %v5185_v24 = vsel %vm887_vm3, 0.0, %v909_v27  ;;  %v3489_v41 = vpop.f32.mrb[17].mxu0  ;;  %v5188_v2 = vpack.c.bf16 %v5178_v25, %v903_v13  ;;  %3647 = vmatprep.subr.bf16.mxu1 %v4124_v4  ;;  %v5191_v34 = vpack.c.bf16 %v5181_v63, %v906_v3  ;;  %v788_v22 = vadd.f32 %v5058_v37, %v787_v16 }
 0x20f   : > { %v790_v48 = vpop.f32.mrb[18].mxu0  ;;  %v742_v58 = vsel %vm710_vm6, %v686_v14, %v726_v45  ;;  %v1016_v29 = vsel %vm1008_vm1, %v1014_v26, %v1015_v23  ;;  %v1018_v13 = vsel %vm1008_vm1, %v1015_v23, %v1017_v11  ;;  %v5204_v3 = vsel %vm887_vm3, %v913_v50, 0.0 }
 0x210   : > { %v791_v44 = vadd.f32 %v5058_v37, %v790_v48  ;;  %v3490_v46 = vpop.f32.mrb[19].mxu0  ;;  %v910_v10 = vrot.slane %v742_v58, 7  ;;  %3631 = vmatprep.mubr.msk.bf16.mxu1 %vm5097_vm12, %v5188_v2  ;;  %vm794_vm7 = vcmp.gt.f32.partialorder %v788_v22, 0.0  ;;  %v796_v48 = vmul.f32 0.01, %v788_v22 }
 0x211   : > { %3632 = vmatmul.mubr.msk.bf16.gmra.mrb[8].mxu1 %vm5097_vm12, %v5191_v34  ;;  %v5221_v39 = vsel %vm887_vm3, %v912_v0, %v913_v50  ;;  %v1066_v50 = vpack.c.bf16 %v1018_v13, %v1016_v29  ;;  %v1025_v29 = vrot.slane %v5138_v54, 1  ;;  %v4130_v13 = vld [vmem:[#allocation10 + $0x138] sm:$0xff]  }
 0x212   : > { %vm795_vm8 = vcmp.gt.f32.partialorder %v791_v44, 0.0  ;;  %v797_v11 = vmul.f32 0.01, %v791_v44  ;;  %v5215_v23 = vsel %vm887_vm3, %v910_v10, 0.0  ;;  %3648 = vmatpush3.bf16.msra.mxu1 %v4124_v4  ;;  %v798_v58 = vsel %vm794_vm7, %v788_v22, %v796_v48 }
 0x213   : > { %v5218_v26 = vsel %vm887_vm3, %v909_v27, %v910_v10  ;;  %v804_v46 = vmul.f32 %v5067_v59, %v798_v58  ;;  %3649 = vmatprep.subr.bf16.mxu1 %v4126_v57  ;;  %v5231_v22 = vpack.c.bf16 %v5221_v39, %v912_v0 }
 0x214   : > { %v799_v16 = vsel %vm795_vm8, %v791_v44, %v797_v11  ;;  %v5228_v4 = vpack.c.bf16 %v5218_v26, %v909_v27  ;;  %v1021_v44 = vsel %vm1008_vm1, %v1019_v60, %v1020_v19  ;;  %v1024_v27 = vrot.slane %v5112_v35, 1 }
 0x215   : > { %v805_v61 = vmul.f32 %v5067_v59, %v799_v16  ;;  %v5233_v10 = vrot.slane %v804_v46, 7  ;;  %v1023_v59 = vsel %vm1008_vm1, %v1020_v19, %v1022_v6  ;;  %v1029_v60 = vrot.slane %v5102_v30, 1 }
 0x216   : > { %3650 = vmatpush3.bf16.msra.mxu1 %v4126_v57  ;;  %3635 = vmatprep.mubr.msk.bf16.mxu1 %vm5097_vm12, %v5228_v4  ;;  %v5249_v0 = vpack.c.bf16 %v1023_v59, %v1021_v44  ;;  %v1030_v6 = vrot.slane %v5131_v51, 1  ;;  %v1035_v19 = vrot.slane %v5178_v25, 1  ;;  %v1026_v58 = vsel %vm1008_vm1, %v1024_v27, %v1025_v29 }
 0x217   : > { %v889_v48 = vrot.slane %v805_v61, 7  ;;  %3651 = vmatprep.subr.bf16.mxu1 %v4128_v7  ;;  %v5255_v16 = vsel %vm887_vm3, 0.0, %v5233_v10  ;;  %v1034_v61 = vrot.slane %v5157_v20, 1  ;;  %v1028_v46 = vsel %vm1008_vm1, %v1025_v29, %v1027_v56 }
 0x218   : > { %v5274_v44 = vpack.c.bf16 %v1028_v46, %v1026_v58  ;;  %v1009_v59 = vrot.slane %v5255_v16, 1  ;;  %v1031_v27 = vsel %vm1008_vm1, %v1029_v60, %v1030_v6  ;;  %v1033_v56 = vsel %vm1008_vm1, %v1030_v6, %v1032_v43  ;;  %v4132_v58 = vld [vmem:[#allocation10 + $0x140] sm:$0xff]  }
 0x219   : > { %v5262_v57 = vsel %vm887_vm3, %v5233_v10, %v889_v48  ;;  %v5265_v11 = vsel %vm887_vm3, %v889_v48, 0.0  ;;  %3636 = vmatmul.mubr.msk.bf16.gmra.mrb[12].mxu1 %vm5097_vm12, %v5231_v22  ;;  %v1036_v48 = vsel %vm1008_vm1, %v1034_v61, %v1035_v19  ;;  %v1039_v29 = vrot.slane %v5150_v21, 1  ;;  %v4137_v61 = vld [vmem:[#allocation10 + $0x8] sm:$0xff]  }
 0x21a   : > { %v1010_v41 = vrot.slane %v5262_v57, 1  ;;  %v1012_v40 = vrot.slane %v5265_v11, 1  ;;  %3652 = vmatpush3.bf16.msra.mxu1 %v4128_v7  ;;  %3655 = vmatprep.mubr.bf16.mxu1 %v1066_v50  ;;  %v5287_v45 = vpack.c.bf16 %v1033_v56, %v1031_v27  ;;  %v1038_v7 = vsel %vm1008_vm1, %v1035_v19, %v1037_v53 }
 0x21b   : > { %3653 = vmatprep.subr.bf16.mxu1 %v4130_v13  ;;  %v5292_v32 = vpack.c.bf16 %v1038_v7, %v1036_v48  ;;  %v1040_v43 = vrot.slane %v5181_v63, 1  ;;  %v1044_v6 = vrot.slane %v5185_v24, 1  ;;  %v1045_v12 = vrot.slane %v5218_v26, 1 }
 0x21c   : > { %v1011_v46 = vsel %vm1008_vm1, %v1009_v59, %v1010_v41  ;;  %v1013_v14 = vsel %vm1008_vm1, %v1010_v41, %v1012_v40  ;;  %v1804_v59 = vrot.slane %v5175_v17, 1  ;;  %v1805_v40 = vrot.slane %v5221_v39, 1 }
 0x21d   : > { %v1065_v60 = vpack.c.bf16 %v1013_v14, %v1011_v46  ;;  %v1386_v41 = vrot.slane %v5072_v62, 2  ;;  %v1041_v53 = vsel %vm1008_vm1, %v1039_v29, %v1040_v43  ;;  %v1043_v14 = vsel %vm1008_vm1, %v1040_v43, %v1042_v47  ;;  %v4134_v46 = vld [vmem:[#allocation10 + $0x148] sm:$0xff]  }
 0x21e   : > { %3654 = vmatpush3.bf16.msra.mxu1 %v4130_v13  ;;  %v5809_v19 = vrot.slane %v5085_v8, 2  ;;  %v5810_v27 = vrot.slane %v5093_v18, 2  ;;  %v1396_v48 = vrot.slane %v5112_v35, 2  ;;  %v5310_v62 = vpack.c.bf16 %v1043_v14, %v1041_v53 }
 0x21f   : > { %3527 = vmatprep.mubr.bf16.mxu0 %v1065_v60  ;;  %3671 = vmatprep.subr.bf16.mxu1 %v4132_v58  ;;  %v1046_v13 = vsel %vm1008_vm1, %v1044_v6, %v1045_v12  ;;  %v5811_v29 = vrot.slane %v5215_v23, 1  ;;  %v1397_v47 = vrot.slane %v5138_v54, 2  ;;  %v1806_v35 = vsel %vm1008_vm1, %v1804_v59, %v1805_v40 }
 0x220   : > { %v1390_v56 = vsel %vm1380_vm9, %v5810_v27, %v5809_v19  ;;  %3528 = vmatmul.mubr.bf16.vlgmr.msra.gmra.mrb[24].mxu0 %v1066_v50  ;;  %v5812_v50 = vrot.slane %v5204_v3, 1  ;;  %v1401_v43 = vrot.slane %v5102_v30, 2  ;;  %v5813_v54 = vmov %v5810_v27 }
 0x221   : > { %v1048_v7 = vsel %vm1008_vm1, %v1045_v12, %v5811_v29  ;;  %3531 = vmatprep.mubr.bf16.mxu0 %v5249_v0  ;;  %3544 = vmatpush3.bf16.msra.mxu0 %v5051_v36  ;;  %v4139_v12 = vld [vmem:[#allocation10 + $0x10] sm:$0xff]   ;;  %v1388_v36 = vsel %vm1380_vm9, %v1386_v41, %v5813_v54  ;;  %v5814_v53 = vrot.slane %v5080_v5, 2  ;;  %v5815_v59 = vrot.slane %v5065_v55, 2 }
 0x222   : > { %v5319_v8 = vpack.c.bf16 %v1048_v7, %v1046_v13  ;;  %v1808_v60 = vsel %vm1008_vm1, %v1805_v40, %v5812_v50  ;;  %3656 = vmatmul.mubr.bf16.vlgmr.msra.gmra.mrb[0].mxu1 %v5249_v0  ;;  %3545 = vmatprep.subr.bf16.mxu0 %v4137_v61  ;;  %v1402_v40 = vrot.slane %v5131_v51, 2  ;;  %v5339_v30 = vpack.c.bf16 %v1390_v56, %v1388_v36  ;;  %v4136_v55 = vld [vmem:[#allocation10 + $0x150] sm:$0xff]   ;;  %v4138_v36 = vld [vmem:[#allocation10 + $0x158] sm:$0xff]  }
 0x223   : > { %v5327_v6 = vpack.c.bf16 %v1808_v60, %v1806_v35  ;;  %v1393_v14 = vsel %vm1380_vm9, %v5815_v59, %v5814_v53  ;;  %3672 = vmatpush3.bf16.msra.mxu1 %v4132_v58  ;;  %3659 = vmatprep.mubr.bf16.mxu1 %v5274_v44  ;;  %v5816_v19 = vrot.slane %v5075_v1, 2  ;;  %v5817_v18 = vmov %v5814_v53 }
 0x224   : > { %v1398_v41 = vsel %vm1380_vm9, %v1396_v48, %v1397_v47  ;;  %v1406_v13 = vrot.slane %v5157_v20, 2  ;;  %3673 = vmatprep.subr.bf16.mxu1 %v4134_v46  ;;  %v5818_v51 = vrot.slane %v5134_v52, 2  ;;  %v3095_v56 = vpack.c.bf16 %v5262_v57, %v5233_v10  ;;  %v4141_v52 = vld [vmem:[#allocation10 + $0x18] sm:$0xff]  }
 0x225   : > { %v1395_v27 = vsel %vm1380_vm9, %v5817_v18, %v5816_v19  ;;  %v1403_v1 = vsel %vm1380_vm9, %v1401_v43, %v1402_v40  ;;  %3546 = vmatpush3.bf16.msra.mxu0 %v4137_v61  ;;  %v5819_v48 = vrot.slane %v5115_v38, 2  ;;  %v1407_v7 = vrot.slane %v5178_v25, 2 }
 0x226   : > { %v5348_v29 = vpack.c.bf16 %v1395_v27, %v1393_v14  ;;  %v1400_v58 = vsel %vm1380_vm9, %v1397_v47, %v5818_v51  ;;  %v1411_v35 = vrot.slane %v5150_v21, 2  ;;  %3547 = vmatprep.subr.bf16.mxu0 %v4139_v12  ;;  %v1412_v50 = vrot.slane %v5181_v63, 2 }
 0x227   : > { %v5357_v5 = vpack.c.bf16 %v1400_v58, %v1398_v41  ;;  %v1405_v20 = vsel %vm1380_vm9, %v1402_v40, %v5819_v48  ;;  %v1416_v60 = vrot.slane %v5185_v24, 2  ;;  %v1417_v61 = vrot.slane %v5218_v26, 2  ;;  %3674 = vmatpush3.bf16.msra.mxu1 %v4134_v46  ;;  %v4140_v41 = vld [vmem:[#allocation10 + $0x160] sm:$0xff]   ;;  %v4142_v48 = vld [vmem:[#allocation10 + $0x168] sm:$0xff]  }
 0x228   : > { %v5364_v47 = vpack.c.bf16 %v1405_v20, %v1403_v1  ;;  %v1408_v38 = vsel %vm1380_vm9, %v1406_v13, %v1407_v7  ;;  %v5820_v43 = vrot.slane %v5169_v49, 2  ;;  %v1990_v21 = vrot.slane %v5175_v17, 2  ;;  %3675 = vmatprep.subr.bf16.mxu1 %v4136_v55  ;;  %3532 = vmatmul.mubr.bf16.gmra.mrb[28].mxu0 %v5274_v44 }
 0x229   : > { %v1991_v54 = vrot.slane %v5221_v39, 2  ;;  %v1413_v24 = vsel %vm1380_vm9, %v1411_v35, %v1412_v50  ;;  %v5821_v26 = vrot.slane %v5160_v42, 2  ;;  %v1381_v49 = vrot.slane %v5255_v16, 2  ;;  %3535 = vmatprep.mubr.bf16.mxu0 %v5287_v45  ;;  %3548 = vmatpush3.bf16.msra.mxu0 %v4139_v12  ;;  %v4143_v16 = vld [vmem:[#allocation10 + $0x20] sm:$0xff]  }
 0x22a   : > { %v1410_v25 = vsel %vm1380_vm9, %v1407_v7, %v5820_v43  ;;  %v1418_v39 = vsel %vm1380_vm9, %v1416_v60, %v1417_v61  ;;  %v5822_v53 = vrot.slane %v5215_v23, 2  ;;  %v1382_v42 = vrot.slane %v5262_v57, 2  ;;  %3660 = vmatmul.mubr.bf16.gmra.mrb[4].mxu1 %v5287_v45  ;;  %3549 = vmatprep.subr.bf16.mxu0 %v4141_v52  ;;  %v4144_v43 = vld [vmem:[#allocation10 + $0x170] sm:$0xff]  }
 0x22b   : > { %v5376_v63 = vpack.c.bf16 %v1410_v25, %v1408_v38  ;;  %v1415_v46 = vsel %vm1380_vm9, %v1412_v50, %v5821_v26  ;;  %v1992_v40 = vsel %vm1380_vm9, %v1990_v21, %v1991_v54  ;;  %v5823_v12 = vrot.slane %v5204_v3, 2  ;;  %3676 = vmatpush3.bf16.msra.mxu1 %v4136_v55  ;;  %3663 = vmatprep.mubr.bf16.mxu1 %v5292_v32  ;;  %v4147_v50 = vld [vmem:[#allocation10 + $0x30] sm:$0xff]   ;;  %v4146_v26 = vld [vmem:[#allocation10 + $0x178] sm:$0xff]  }
 0x22c   : > { %v5388_v17 = vpack.c.bf16 %v1415_v46, %v1413_v24  ;;  %v1420_v59 = vsel %vm1380_vm9, %v1417_v61, %v5822_v53  ;;  %v1384_v18 = vrot.slane %v5265_v11, 2  ;;  %v5407_v27 = vsel %vm1380_vm9, %v1381_v49, %v1382_v42  ;;  %3677 = vmatprep.subr.bf16.mxu1 %v4138_v36  ;;  %v4145_v11 = vld [vmem:[#allocation10 + $0x28] sm:$0xff]  }
 0x22d   : > { %v5396_v14 = vpack.c.bf16 %v1420_v59, %v1418_v39  ;;  %v1994_v19 = vsel %vm1380_vm9, %v1991_v54, %v5823_v12  ;;  %3550 = vmatpush3.bf16.msra.mxu0 %v4141_v52  ;;  %v848_v51 = vpop.f32.mrb[20].mxu0  ;;  %v864_v7 = vstv %s863_s23  ;;  %v4149_v54 = vld [vmem:[#allocation10 + $0x38] sm:$0xff]   ;;  %v4151_v59 = vld [vmem:[#allocation10 + $0x80] sm:$0xff]   ;;  %s4513_s23 = smov [#allocation11]  }
 0x22e   : > { %v5404_v23 = vpack.c.bf16 %v1994_v19, %v1992_v40  ;;  %v5410_v13 = vsel %vm1380_vm9, %v1382_v42, %v1384_v18  ;;  %3551 = vmatprep.subr.bf16.mxu0 %v4143_v16  ;;  %v849_v55 = vadd.f32 %v5058_v37, %v848_v51  ;;  %v3509_v58 = vpop.f32.mrb[21].mxu0  ;;  %s4347_s18 = sshll.u32 %s4513_s23, 4  ;;  %s4348_s18 = int_to_ptr.vmem [resolvable:$false] %s4347_s18 }
 0x22f   : > { %v1437_v3 = vpack.c.bf16 %v5410_v13, %v5407_v27  ;;  %3678 = vmatpush3.bf16.msra.mxu1 %v4138_v36  ;;  %v851_v1 = vpop.f32.mrb[22].mxu0  ;;  %v4150_v58 = vld [vmem:[#allocation10 + $0x188] sm:$0xff]   ;;  %v4168_v27 = vld [vmem:[#allocation10 + $0x1d8] sm:$0xff]   ;;  %s4349_s19 = scalar_lea.vmem %s4348_s18, 4096 }
 0x230   : > { %3679 = vmatprep.subr.bf16.mxu1 %v4140_v41  ;;  %3536 = vmatmul.mubr.bf16.gmra.mrb[32].mxu0 %v5292_v32  ;;  %vm855_vm10 = vcmp.gt.f32.partialorder %v849_v55, 0.0  ;;  %v857_v20 = vmul.f32 0.01, %v849_v55  ;;  %v852_v35 = vadd.f32 %v5058_v37, %v851_v1  ;;  %v3510_v52 = vpop.f32.mrb[23].mxu0  ;;  %v4155_v1 = vld [vmem:[#allocation10 + $0x90] sm:$0xff]   ;;  %v4176_v13 = vld [vmem:[#allocation10 + $0x218] sm:$0xff]  }
 0x231   : > { %3539 = vmatprep.mubr.bf16.mxu0 %v5310_v62  ;;  %3552 = vmatpush3.bf16.msra.mxu0 %v4143_v16  ;;  %v4161_v52 = vld [vmem:[#allocation10 + $0xa8] sm:$0xff]  }
 0x232   : > { %3664 = vmatmul.mubr.bf16.gmra.mrb[8].mxu1 %v5310_v62  ;;  %3553 = vmatprep.subr.bf16.mxu0 %v4145_v11  ;;  %v859_v60 = vsel %vm855_vm10, %v849_v55, %v857_v20  ;;  %vm856_vm11 = vcmp.gt.f32.partialorder %v852_v35, 0.0  ;;  %v858_v61 = vmul.f32 0.01, %v852_v35  ;;  %v4157_v20 = vld [vmem:[#allocation10 + $0x98] sm:$0xff]  }
 0x233   : > { %3680 = vmatpush3.bf16.msra.mxu1 %v4140_v41  ;;  %3667 = vmatprep.mubr.bf16.mxu1 %v5319_v8  ;;  %v865_v38 = vmul.f32 %v864_v7, %v859_v60  ;;  %v4163_v60 = vld [vmem:[#allocation10 + $0xb0] sm:$0xff]  }
 0x234   : > { %3681 = vmatprep.subr.bf16.mxu1 %v4142_v48  ;;  %v860_v25 = vsel %vm856_vm11, %v852_v35, %v858_v61  ;;  %v4156_v35 = vld [vmem:[#allocation10 + $0x1a0] sm:$0xff]   ;;  %v4160_v61 = vld [vmem:[#allocation10 + $0x1b0] sm:$0xff]  }
 0x235   : > { %3554 = vmatpush3.bf16.msra.mxu0 %v4145_v11  ;;  %v5421_v37 = vrot.slane %v865_v38, 7  ;;  %v866_v21 = vmul.f32 %v864_v7, %v860_v25  ;;  %v4153_v11 = vld [vmem:[#allocation10 + $0x88] sm:$0xff]   ;;  %v4159_v7 = vld [vmem:[#allocation10 + $0xa0] sm:$0xff]   ;;  %v4165_v38 = vld [vmem:[#allocation10 + $0xb8] sm:$0xff]  }
 0x236   : > { %3555 = vmatprep.subr.bf16.mxu0 %v4147_v50  ;;  %v4164_v25 = vld [vmem:[#allocation10 + $0x1c0] sm:$0xff]  }
 0x237   : > { %3682 = vmatpush3.bf16.msra.mxu1 %v4142_v48  ;;  %v916_v36 = vrot.slane %v866_v21, 7  ;;  %v957_v24 = vsel %vm887_vm3, 0.0, %v5421_v37  ;;  %v4152_v48 = vld [vmem:[#allocation10 + $0x190] sm:$0xff]   ;;  %v4166_v21 = vld [vmem:[#allocation10 + $0x1c8] sm:$0xff]  }
 0x238   : > { %3683 = vmatprep.subr.bf16.mxu1 %v4144_v43  ;;  %3540 = vmatmul.mubr.bf16.gmra.mrb[36].mxu0 %v5319_v8  ;;  %v2357_v46 = vrot.slane %v957_v24, 1  ;;  %v2543_v49 = vrot.slane %v957_v24, 2 }
 0x239   : > { %3556 = vmatpush3.bf16.msra.mxu0 %v4147_v50  ;;  %3559 = vmatprep.mubr.msk.bf16.mxu0 %vm5097_vm12, %v3095_v56  ;;  %v967_v39 = vsel %vm887_vm3, %v916_v36, 0.0  ;;  %v5434_v53 = vsel %vm887_vm3, %v5421_v37, %v916_v36  ;;  %v4148_v56 = vld [vmem:[#allocation10 + $0x180] sm:$0xff]   ;;  %v4158_v50 = vld [vmem:[#allocation10 + $0x1a8] sm:$0xff]  }
 0x23a   : > { %3668 = vmatmul.mubr.bf16.gmra.mrb[12].mxu1 %v5327_v6  ;;  %3557 = vmatprep.subr.bf16.mxu0 %v4149_v54  ;;  %v3227_v42 = vpack.c.bf16 %v5434_v53, %v5421_v37  ;;  %v2358_v16 = vrot.slane %v5434_v53, 1  ;;  %v2360_v40 = vrot.slane %v967_v39, 1  ;;  %v2544_v10 = vrot.slane %v5434_v53, 2 }
 0x23b   : > { %3684 = vmatpush3.bf16.msra.mxu1 %v4144_v43  ;;  %3687 = vmatprep.mubr.bf16.mxu1 %v5339_v30  ;;  %v2546_v57 = vrot.slane %v967_v39, 2  ;;  %v4162_v43 = vld [vmem:[#allocation10 + $0x1b8] sm:$0xff]  }
 0x23c   : > { %3685 = vmatprep.subr.bf16.mxu1 %v4146_v26  ;;  %v5443_v12 = vsel %vm1008_vm1, %v2357_v46, %v2358_v16  ;;  %v5446_v19 = vsel %vm1008_vm1, %v2358_v16, %v2360_v40  ;;  %v5449_v18 = vsel %vm1380_vm9, %v2543_v49, %v2544_v10  ;;  %v5561_v46 = vld [vmem:[%s5824_s1] ss:$0 sm:$0xff] }
 0x23d   : > { %3558 = vmatpush3.bf16.msra.mxu0 %v4149_v54  ;;  %v2364_v41 = vpack.c.bf16 %v5446_v19, %v5443_v12  ;;  %v5454_v51 = vsel %vm1380_vm9, %v2544_v10, %v2546_v57  ;;  %v4189_v10 = vld [vmem:[%s4970_s8 + $0x8] sm:$0xff]   ;;  %v4190_v19 = vld [vmem:[%s4970_s8] sm:$0xff]  }
 0x23e   : > { %3575 = vmatprep.subr.bf16.mxu0 %v4151_v59  ;;  %v2550_v55 = vpack.c.bf16 %v5454_v51, %v5449_v18  ;;  %v2802_v57 = vunpack.c.l.bf16 %v4189_v10  ;;  %v2800_v18 = vunpack.c.l.bf16 %v4190_v19 }
 0x23f   : > { %3686 = vmatpush3.bf16.msra.mxu1 %v4146_v26 }
 0x240   : > { %3703 = vmatprep.subr.bf16.mxu1 %v4148_v56  ;;  %3560 = vmatmul.mubr.msk.bf16.vlgmr.msra.gmra.mrb[24].mxu0 %vm5097_vm12, %v5105_v31  ;;  %v4154_v31 = vld [vmem:[#allocation10 + $0x198] sm:$0xff]  }
 0x241   : > { %3563 = vmatprep.mubr.msk.bf16.mxu0 %vm5097_vm12, %v5109_v33  ;;  %3576 = vmatpush3.bf16.msra.mxu0 %v4151_v59 }
 0x242   : > { %3688 = vmatmul.mubr.bf16.vlgmr.msra.gmra.mrb[0].mxu1 %v5348_v29  ;;  %3577 = vmatprep.subr.bf16.mxu0 %v4153_v11 }
 0x243   : > { %3704 = vmatpush3.bf16.msra.mxu1 %v4148_v56  ;;  %3691 = vmatprep.mubr.bf16.mxu1 %v5357_v5 }
 0x244   : > { %3705 = vmatprep.subr.bf16.mxu1 %v4150_v58 }
 0x245   : > { %3578 = vmatpush3.bf16.msra.mxu0 %v4153_v11  ;;  %v2803_v11 = vunpack.c.h.bf16 %v4189_v10 }
 0x246   : > { %3579 = vmatprep.subr.bf16.mxu0 %v4155_v1 }
 0x247   : > { %3706 = vmatpush3.bf16.msra.mxu1 %v4150_v58 }
 0x248   : > { %3707 = vmatprep.subr.bf16.mxu1 %v4152_v48  ;;  %3564 = vmatmul.mubr.msk.bf16.gmra.mrb[28].mxu0 %vm5097_vm12, %v5143_v9 }
 0x249   : > { %3567 = vmatprep.mubr.msk.bf16.mxu0 %vm5097_vm12, %v5146_v15  ;;  %3580 = vmatpush3.bf16.msra.mxu0 %v4155_v1  ;;  %v2801_v1 = vunpack.c.h.bf16 %v4190_v19 }
 0x24a   : > { %3692 = vmatmul.mubr.bf16.gmra.mrb[4].mxu1 %v5364_v47  ;;  %3581 = vmatprep.subr.bf16.mxu0 %v4157_v20 }
 0x24b   : > { %3708 = vmatpush3.bf16.msra.mxu1 %v4152_v48  ;;  %3695 = vmatprep.mubr.bf16.mxu1 %v5376_v63 }
 0x24c   : > { %3709 = vmatprep.subr.bf16.mxu1 %v4154_v31 }
 0x24d   : > { %3582 = vmatpush3.bf16.msra.mxu0 %v4157_v20 }
 0x24e   : > { %3583 = vmatprep.subr.bf16.mxu0 %v4159_v7 }
 0x24f   : > { %3710 = vmatpush3.bf16.msra.mxu1 %v4154_v31 }
 0x250   : > { %3711 = vmatprep.subr.bf16.mxu1 %v4156_v35  ;;  %3568 = vmatmul.mubr.msk.bf16.gmra.mrb[32].mxu0 %vm5097_vm12, %v5188_v2 }
 0x251   : > { %3571 = vmatprep.mubr.msk.bf16.mxu0 %vm5097_vm12, %v5191_v34  ;;  %3584 = vmatpush3.bf16.msra.mxu0 %v4159_v7 }
 0x252   : > { %3696 = vmatmul.mubr.bf16.gmra.mrb[8].mxu1 %v5388_v17  ;;  %3585 = vmatprep.subr.bf16.mxu0 %v4161_v52 }
 0x253   : > { %3712 = vmatpush3.bf16.msra.mxu1 %v4156_v35  ;;  %3699 = vmatprep.mubr.bf16.mxu1 %v5396_v14 }
 0x254   : > { %3713 = vmatprep.subr.bf16.mxu1 %v4158_v50 }
 0x255   : > { %3586 = vmatpush3.bf16.msra.mxu0 %v4161_v52 }
 0x256   : > { %3587 = vmatprep.subr.bf16.mxu0 %v4163_v60 }
 0x257   : > { %3714 = vmatpush3.bf16.msra.mxu1 %v4158_v50 }
 0x258   : > { %3715 = vmatprep.subr.bf16.mxu1 %v4160_v61  ;;  %3572 = vmatmul.mubr.msk.bf16.gmra.mrb[36].mxu0 %vm5097_vm12, %v5228_v4 }
 0x259   : > { %3588 = vmatpush3.bf16.msra.mxu0 %v4163_v60  ;;  %3591 = vmatprep.mubr.bf16.mxu0 %v1437_v3 }
 0x25a   : > { %3700 = vmatmul.mubr.bf16.gmra.mrb[12].mxu1 %v5404_v23  ;;  %3589 = vmatprep.subr.bf16.mxu0 %v4165_v38 }
 0x25b   : > { %3716 = vmatpush3.bf16.msra.mxu1 %v4160_v61  ;;  %3719 = vmatprep.mubr.msk.bf16.mxu1 %vm5097_vm12, %v5109_v33  ;;  %v4167_v33 = vld [vmem:[#allocation10 + $0x1d0] sm:$0xff]  }
 0x25c   : > { %3717 = vmatprep.subr.bf16.mxu1 %v4162_v43 }
 0x25d   : > { %3590 = vmatpush3.bf16.msra.mxu0 %v4165_v38 }
 0x25f   : > { %3718 = vmatpush3.bf16.msra.mxu1 %v4162_v43 }
 0x260   : > { %3735 = vmatprep.subr.bf16.mxu1 %v4164_v25  ;;  %3592 = vmatmul.mubr.bf16.vlgmr.msra.gmra.mrb[24].mxu0 %v5339_v30  ;;  %v4175_v30 = vld [vmem:[#allocation10 + $0x210] sm:$0xff]  }
 0x261   : > { %3595 = vmatprep.mubr.bf16.mxu0 %v5348_v29 }
 0x262   : > { %3720 = vmatmul.mubr.msk.bf16.vlgmr.msra.gmra.mrb[0].mxu1 %vm5097_vm12, %v5143_v9  ;;  %v4169_v9 = vld [vmem:[#allocation10 + $0x1e0] sm:$0xff]  }
 0x263   : > { %3736 = vmatpush3.bf16.msra.mxu1 %v4164_v25  ;;  %3723 = vmatprep.mubr.msk.bf16.mxu1 %vm5097_vm12, %v5146_v15  ;;  %v4170_v15 = vld [vmem:[#allocation10 + $0x1e8] sm:$0xff]  }
 0x264   : > { %3737 = vmatprep.subr.bf16.mxu1 %v4166_v21 }
 0x267   : > { %3738 = vmatpush3.bf16.msra.mxu1 %v4166_v21 }
 0x268   : > { %3739 = vmatprep.subr.bf16.mxu1 %v4167_v33  ;;  %3596 = vmatmul.mubr.bf16.gmra.mrb[28].mxu0 %v5357_v5 }
 0x269   : > { %3599 = vmatprep.mubr.bf16.mxu0 %v5364_v47 }
 0x26a   : > { %3724 = vmatmul.mubr.msk.bf16.gmra.mrb[4].mxu1 %vm5097_vm12, %v5188_v2  ;;  %v4171_v2 = vld [vmem:[#allocation10 + $0x1f0] sm:$0xff]  }
 0x26b   : > { %3740 = vmatpush3.bf16.msra.mxu1 %v4167_v33  ;;  %3727 = vmatprep.mubr.msk.bf16.mxu1 %vm5097_vm12, %v5191_v34  ;;  %v4172_v34 = vld [vmem:[#allocation10 + $0x1f8] sm:$0xff]  }
 0x26c   : > { %3741 = vmatprep.subr.bf16.mxu1 %v4168_v27 }
 0x26f   : > { %3742 = vmatpush3.bf16.msra.mxu1 %v4168_v27 }
 0x270   : > { %3743 = vmatprep.subr.bf16.mxu1 %v4169_v9  ;;  %3600 = vmatmul.mubr.bf16.gmra.mrb[32].mxu0 %v5376_v63 }
 0x271   : > { %3603 = vmatprep.mubr.bf16.mxu0 %v5388_v17 }
 0x272   : > { %3728 = vmatmul.mubr.msk.bf16.gmra.mrb[8].mxu1 %vm5097_vm12, %v5228_v4  ;;  %v4173_v4 = vld [vmem:[#allocation10 + $0x200] sm:$0xff]  }
 0x273   : > { %3744 = vmatpush3.bf16.msra.mxu1 %v4169_v9  ;;  %3731 = vmatprep.mubr.msk.bf16.mxu1 %vm5097_vm12, %v5231_v22  ;;  %v4174_v22 = vld [vmem:[#allocation10 + $0x208] sm:$0xff]  }
 0x274   : > { %3745 = vmatprep.subr.bf16.mxu1 %v4170_v15 }
 0x277   : > { %3746 = vmatpush3.bf16.msra.mxu1 %v4170_v15 }
 0x278   : > { %3747 = vmatprep.subr.bf16.mxu1 %v4171_v2  ;;  %3604 = vmatmul.mubr.bf16.gmra.mrb[36].mxu0 %v5396_v14 }
 0x27a   : > { %3732 = vmatmul.mubr.msk.bf16.gmra.mrb[12].mxu1 %vm5097_vm12, %v3227_v42 }
 0x27b   : > { %3748 = vmatpush3.bf16.msra.mxu1 %v4171_v2  ;;  %3751 = vmatprep.mubr.bf16.mxu1 %v5249_v0  ;;  %v4178_v0 = vld [vmem:[#allocation10 + $0x228] sm:$0xff]  }
 0x27c   : > { %3749 = vmatprep.subr.bf16.mxu1 %v4172_v34 }
 0x27f   : > { %3750 = vmatpush3.bf16.msra.mxu1 %v4172_v34  ;;  %v4191_v34 = vld [vmem:[%s4970_s8 + $0x18] sm:$0xff]  }
 0x280   : > { %3767 = vmatprep.subr.bf16.mxu1 %v4173_v4 }
 0x282   : > { %3752 = vmatmul.mubr.bf16.vlgmr.msra.gmra.mrb[0].mxu1 %v5274_v44  ;;  %v4180_v44 = vld [vmem:[#allocation10 + $0x238] sm:$0xff]  }
 0x283   : > { %3768 = vmatpush3.bf16.msra.mxu1 %v4173_v4  ;;  %3755 = vmatprep.mubr.bf16.mxu1 %v5287_v45  ;;  %v4179_v45 = vld [vmem:[#allocation10 + $0x230] sm:$0xff]   ;;  %v2806_v4 = vunpack.c.l.bf16 %v4191_v34 }
 0x284   : > { %3769 = vmatprep.subr.bf16.mxu1 %v4174_v22 }
 0x287   : > { %3770 = vmatpush3.bf16.msra.mxu1 %v4174_v22 }
 0x288   : > { %3771 = vmatprep.subr.bf16.mxu1 %v4175_v30 }
 0x28a   : > { %3756 = vmatmul.mubr.bf16.gmra.mrb[4].mxu1 %v5292_v32 }
 0x28b   : > { %3772 = vmatpush3.bf16.msra.mxu1 %v4175_v30  ;;  %3759 = vmatprep.mubr.bf16.mxu1 %v5310_v62 }
 0x28c   : > { %3773 = vmatprep.subr.bf16.mxu1 %v4176_v13 }
 0x28f   : > { %3774 = vmatpush3.bf16.msra.mxu1 %v4176_v13  ;;  %v4192_v13 = vld [vmem:[%s4970_s8 + $0x10] sm:$0xff]  }
 0x290   : > { %3775 = vmatprep.subr.bf16.mxu1 %v4177_v28 }
 0x292   : > { %3760 = vmatmul.mubr.bf16.gmra.mrb[8].mxu1 %v5319_v8 }
 0x293   : > { %3776 = vmatpush3.bf16.msra.mxu1 %v4177_v28  ;;  %3763 = vmatprep.mubr.bf16.mxu1 %v5327_v6  ;;  %v2804_v28 = vunpack.c.l.bf16 %v4192_v13 }
 0x294   : > { %3777 = vmatprep.subr.bf16.mxu1 %v4178_v0 }
 0x297   : > { %3778 = vmatpush3.bf16.msra.mxu1 %v4178_v0 }
 0x298   : > { %3779 = vmatprep.subr.bf16.mxu1 %v4179_v45 }
 0x29a   : > { %3764 = vmatmul.mubr.bf16.gmra.mrb[12].mxu1 %v2364_v41 }
 0x29b   : > { %3780 = vmatpush3.bf16.msra.mxu1 %v4179_v45  ;;  %3783 = vmatprep.mubr.bf16.mxu1 %v5348_v29 }
 0x29c   : > { %3781 = vmatprep.subr.bf16.mxu1 %v4180_v44 }
 0x29f   : > { %3782 = vmatpush3.bf16.msra.mxu1 %v4180_v44  ;;  %v2807_v44 = vunpack.c.h.bf16 %v4191_v34 }
 0x2a2   : > { %3784 = vmatmul.mubr.bf16.vlgmr.msra.gmra.mrb[0].mxu1 %v5357_v5 }
 0x2a3   : > { %3787 = vmatprep.mubr.bf16.mxu1 %v5364_v47 }
 0x2aa   : > { %3788 = vmatmul.mubr.bf16.gmra.mrb[4].mxu1 %v5376_v63 }
 0x2ab   : > { %3791 = vmatprep.mubr.bf16.mxu1 %v5388_v17 }
 0x2b2   : > { %3792 = vmatmul.mubr.bf16.gmra.mrb[8].mxu1 %v5396_v14 }
 0x2b3   : > { %3795 = vmatprep.mubr.bf16.mxu1 %v5404_v23 }
 0x2ba   : > { %3796 = vmatmul.mubr.bf16.gmra.mrb[12].mxu1 %v2550_v55 }
 0x333   : > { %v3593_v32 = vpop.f32.mrb[24].mxu0 }
 0x334   : > { %v1544_v62 = vpop.f32.mrb[25].mxu0 }
 0x335   : > { %v3594_v8 = vpop.f32.mrb[26].mxu0 }
 0x336   : > { %v1547_v6 = vpop.f32.mrb[27].mxu0 }
 0x33b   : > { %v3597_v29 = vpop.f32.mrb[28].mxu0 }
 0x33c   : > { %v1560_v5 = vpop.f32.mrb[29].mxu0 }
 0x33d   : > { %v3598_v3 = vpop.f32.mrb[30].mxu0 }
 0x33e   : > { %v1563_v47 = vpop.f32.mrb[31].mxu0 }
 0x343   : > { %v5542_v37 = vpop.f32.mrb[32].mxu0 }
 0x344   : > { %v5544_v63 = vpop.f32.mrb[33].mxu0 }
 0x345   : > { %v5546_v17 = vpop.f32.mrb[34].mxu0 }
 0x346   : > { %v5548_v14 = vpop.f32.mrb[35].mxu0 }
 0x34b   : > { %v5550_v23 = vpop.f32.mrb[36].mxu0 }
 0x34c   : > { %v5552_v54 = vpop.f32.mrb[37].mxu0 }
 0x34d   : > { %v5554_v36 = vpop.f32.mrb[38].mxu0 }
 0x34e   : > { %v5556_v24 = vpop.f32.mrb[39].mxu0 }
 0x375   : > { %v3785_v26 = vpop.f32.mrb[0].mxu1 }
 0x376   : > { %v3799_v49 = vadd.f32 %v3785_v26, %v3593_v32  ;;  %v2650_v39 = vpop.f32.mrb[1].mxu1 }
 0x377   : > { %v3800_v53 = vadd.f32 %v2650_v39, %v1544_v62  ;;  %v3786_v59 = vpop.f32.mrb[2].mxu1 }
 0x378   : > { %v2738_v42 = vadd.f32 %v3799_v49, %v5561_v46  ;;  %v3801_v16 = vadd.f32 %v3786_v59, %v3594_v8  ;;  %v2653_v40 = vpop.f32.mrb[3].mxu1  ;;  %v2805_v8 = vunpack.c.h.bf16 %v4192_v13 }
 0x379   : > { %v2736_v56 = vadd.f32 %v3800_v53, %v5561_v46  ;;  %v3802_v12 = vadd.f32 %v2653_v40, %v1547_v6 }
 0x37a   : > { %vm2754_vm3 = vcmp.gt.f32.partialorder %v2738_v42, 0.0  ;;  %v2770_v41 = vmul.f32 0.01, %v2738_v42  ;;  %v2739_v51 = vadd.f32 %v3801_v16, %v5561_v46 }
 0x37b   : > { %vm2752_vm12 = vcmp.gt.f32.partialorder %v2736_v56, 0.0  ;;  %v2768_v55 = vmul.f32 0.01, %v2736_v56  ;;  %v2737_v58 = vadd.f32 %v3802_v12, %v5561_v46 }
 0x37c   : > { %v2786_v48 = vsel %vm2754_vm3, %v2738_v42, %v2770_v41  ;;  %vm2755_vm13 = vcmp.gt.f32.partialorder %v2739_v51, 0.0  ;;  %v2771_v20 = vmul.f32 0.01, %v2739_v51 }
 0x37d   : > { %v2818_v31 = vadd.f32 %v2802_v57, %v2786_v48  ;;  %v2784_v7 = vsel %vm2752_vm12, %v2736_v56, %v2768_v55  ;;  %vm2753_vm14 = vcmp.gt.f32.partialorder %v2737_v58, 0.0  ;;  %v2769_v35 = vmul.f32 0.01, %v2737_v58  ;;  %v3789_v52 = vpop.f32.mrb[4].mxu1 }
 0x37e   : > { %v2816_v50 = vadd.f32 %v2800_v18, %v2784_v7  ;;  %v2787_v60 = vsel %vm2755_vm13, %v2739_v51, %v2771_v20  ;;  %v3803_v61 = vadd.f32 %v3789_v52, %v3597_v29  ;;  %v2666_v38 = vpop.f32.mrb[5].mxu1  ;;  %v4193_v18 = vld [vmem:[%s4970_s8 + $0x28] sm:$0xff]  }
 0x37f   : > { %2834 = vst [vmem:[%s5570_s13 + $0x10] sm:$0xff] %v2818_v31  ;;  %v2819_v43 = vadd.f32 %v2803_v11, %v2787_v60  ;;  %v2785_v25 = vsel %vm2753_vm14, %v2737_v58, %v2769_v35  ;;  %v3804_v21 = vadd.f32 %v2666_v38, %v1560_v5  ;;  %v3790_v33 = vpop.f32.mrb[6].mxu1  ;;  %v2810_v41 = vunpack.c.l.bf16 %v4193_v18  ;;  %v4194_v11 = vld [vmem:[%s4970_s8 + $0x20] sm:$0xff]  }
 0x380   : > { %2832 = vst [vmem:[%s5570_s13] sm:$0xff] %v2816_v50  ;;  %v2817_v27 = vadd.f32 %v2801_v1, %v2785_v25  ;;  %v2742_v9 = vadd.f32 %v3803_v61, %v5561_v46  ;;  %v3805_v15 = vadd.f32 %v3790_v33, %v3598_v3  ;;  %v2669_v2 = vpop.f32.mrb[7].mxu1  ;;  %v2808_v55 = vunpack.c.l.bf16 %v4194_v11 }
 0x381   : > { %2835 = vst [vmem:[%s5570_s13 + $0x18] sm:$0xff] %v2819_v43  ;;  %v2740_v22 = vadd.f32 %v3804_v21, %v5561_v46  ;;  %v3806_v30 = vadd.f32 %v2669_v2, %v1563_v47  ;;  %v2811_v1 = vunpack.c.h.bf16 %v4193_v18  ;;  %v2809_v20 = vunpack.c.h.bf16 %v4194_v11 }
 0x382   : > { %2833 = vst [vmem:[%s5570_s13 + $0x8] sm:$0xff] %v2817_v27  ;;  %vm2758_vm15 = vcmp.gt.f32.partialorder %v2742_v9, 0.0  ;;  %v2774_v0 = vmul.f32 0.01, %v2742_v9  ;;  %v2743_v45 = vadd.f32 %v3805_v15, %v5561_v46 }
 0x383   : > { %vm2756_vm0 = vcmp.gt.f32.partialorder %v2740_v22, 0.0  ;;  %v2772_v32 = vmul.f32 0.01, %v2740_v22  ;;  %v2741_v62 = vadd.f32 %v3806_v30, %v5561_v46 }
 0x384   : > { %v2790_v6 = vsel %vm2758_vm15, %v2742_v9, %v2774_v0  ;;  %vm2759_vm1 = vcmp.gt.f32.partialorder %v2743_v45, 0.0  ;;  %v2775_v29 = vmul.f32 0.01, %v2743_v45 }
 0x385   : > { %v2822_v5 = vadd.f32 %v2806_v4, %v2790_v6  ;;  %v2788_v3 = vsel %vm2756_vm0, %v2740_v22, %v2772_v32  ;;  %vm2757_vm2 = vcmp.gt.f32.partialorder %v2741_v62, 0.0  ;;  %v2773_v47 = vmul.f32 0.01, %v2741_v62  ;;  %v3793_v26 = vpop.f32.mrb[8].mxu1 }
 0x386   : > { %v2820_v49 = vadd.f32 %v2804_v28, %v2788_v3  ;;  %v2791_v39 = vsel %vm2759_vm1, %v2743_v45, %v2775_v29  ;;  %v3807_v53 = vadd.f32 %v3793_v26, %v5542_v37  ;;  %v2682_v59 = vpop.f32.mrb[9].mxu1 }
 0x387   : > { %2838 = vst [vmem:[%s5570_s13 + $0x30] sm:$0xff] %v2822_v5  ;;  %v2823_v42 = vadd.f32 %v2807_v44, %v2791_v39  ;;  %v2789_v16 = vsel %vm2757_vm2, %v2741_v62, %v2773_v47  ;;  %v3808_v40 = vadd.f32 %v2682_v59, %v5544_v63  ;;  %v3794_v10 = vpop.f32.mrb[10].mxu1 }
 0x388   : > { %2836 = vst [vmem:[%s5570_s13 + $0x20] sm:$0xff] %v2820_v49  ;;  %v2821_v57 = vadd.f32 %v2805_v8, %v2789_v16  ;;  %v2746_v56 = vadd.f32 %v3807_v53, %v5561_v46  ;;  %v3809_v12 = vadd.f32 %v3794_v10, %v5546_v17  ;;  %v2685_v19 = vpop.f32.mrb[11].mxu1 }
 0x389   : > { %2839 = vst [vmem:[%s5570_s13 + $0x38] sm:$0xff] %v2823_v42  ;;  %v2744_v37 = vadd.f32 %v3808_v40, %v5561_v46  ;;  %v3810_v51 = vadd.f32 %v2685_v19, %v5548_v14 }
 0x38a   : > { %2837 = vst [vmem:[%s5570_s13 + $0x28] sm:$0xff] %v2821_v57  ;;  %vm2762_vm4 = vcmp.gt.f32.partialorder %v2746_v56, 0.0  ;;  %v2778_v63 = vmul.f32 0.01, %v2746_v56  ;;  %v2747_v58 = vadd.f32 %v3809_v12, %v5561_v46 }
 0x38b   : > { %vm2760_vm5 = vcmp.gt.f32.partialorder %v2744_v37, 0.0  ;;  %v2776_v48 = vmul.f32 0.01, %v2744_v37  ;;  %v2745_v17 = vadd.f32 %v3810_v51, %v5561_v46 }
 0x38c   : > { %v2794_v31 = vsel %vm2762_vm4, %v2746_v56, %v2778_v63  ;;  %vm2763_vm6 = vcmp.gt.f32.partialorder %v2747_v58, 0.0  ;;  %v2779_v7 = vmul.f32 0.01, %v2747_v58 }
 0x38d   : > { %v2826_v14 = vadd.f32 %v2810_v41, %v2794_v31  ;;  %v2792_v35 = vsel %vm2760_vm5, %v2744_v37, %v2776_v48  ;;  %vm2761_vm7 = vcmp.gt.f32.partialorder %v2745_v17, 0.0  ;;  %v2777_v52 = vmul.f32 0.01, %v2745_v17  ;;  %v3797_v50 = vpop.f32.mrb[12].mxu1 }
 0x38e   : > { %v2824_v60 = vadd.f32 %v2808_v55, %v2792_v35  ;;  %v2795_v61 = vsel %vm2763_vm6, %v2747_v58, %v2779_v7  ;;  %v3811_v38 = vadd.f32 %v3797_v50, %v5550_v23  ;;  %v2698_v43 = vpop.f32.mrb[13].mxu1  ;;  %v4195_v23 = vld [vmem:[%s4970_s8 + $0x38] sm:$0xff]  }
 0x38f   : > { %2842 = vst [vmem:[%s5570_s13 + $0x50] sm:$0xff] %v2826_v14  ;;  %v2827_v25 = vadd.f32 %v2811_v1, %v2795_v61  ;;  %v2793_v21 = vsel %vm2761_vm7, %v2745_v17, %v2777_v52  ;;  %v3812_v33 = vadd.f32 %v2698_v43, %v5552_v54  ;;  %v3798_v27 = vpop.f32.mrb[14].mxu1  ;;  %v2814_v4 = vunpack.c.l.bf16 %v4195_v23  ;;  %v4196_v54 = vld [vmem:[%s4970_s8 + $0x30] sm:$0xff]   ;;  %s2865_s8 = sshll.u32 %s5570_s13, 4  ;;  %s5614_s8 = int_to_ptr.vmem [resolvable:$true] %s2865_s8 }
 0x390   : > { %2840 = vst [vmem:[%s5570_s13 + $0x40] sm:$0xff] %v2824_v60  ;;  %v2825_v9 = vadd.f32 %v2809_v20, %v2793_v21  ;;  %v2750_v15 = vadd.f32 %v3811_v38, %v5561_v46  ;;  %v3813_v2 = vadd.f32 %v3798_v27, %v5554_v36  ;;  %v2701_v34 = vpop.f32.mrb[15].mxu1  ;;  %v2812_v13 = vunpack.c.l.bf16 %v4196_v54  ;;  %s4343_s7 = scalar_lea.vmem %s5614_s8, 2048  ;;  %p4350_p3 = scmp.lt.s32.totalorder %s5614_s8, %s4348_s18 }
 0x391   : > { %2843 = vst [vmem:[%s5570_s13 + $0x58] sm:$0xff] %v2827_v25  ;;  %v2748_v22 = vadd.f32 %v3812_v33, %v5561_v46  ;;  %v3814_v30 = vadd.f32 %v2701_v34, %v5556_v24  ;;  %v2815_v45 = vunpack.c.h.bf16 %v4195_v23  ;;  %v2813_v32 = vunpack.c.h.bf16 %v4196_v54  ;;  %p4344_p0 = scmp.ne.s32.totalorder %s5614_s8, %s4343_s7  ;;  %p4351_p5 = scmp.lt.s32.totalorder %s4349_s19, %s4343_s7 }
 0x392   : > { %2841 = vst [vmem:[%s5570_s13 + $0x48] sm:$0xff] %v2825_v9  ;;  %vm2766_vm8 = vcmp.gt.f32.partialorder %v2750_v15, 0.0  ;;  %v2782_v28 = vmul.f32 0.01, %v2750_v15  ;;  %v2751_v0 = vadd.f32 %v3813_v2, %v5561_v46 }
 0x393   : > { %vm2764_vm9 = vcmp.gt.f32.partialorder %v2748_v22, 0.0  ;;  %v2780_v36 = vmul.f32 0.01, %v2748_v22  ;;  %v2749_v44 = vadd.f32 %v3814_v30, %v5561_v46  ;;  %p4345_p1 = pnand %p4344_p0, %p5829_p12  ;;  %p4352_p4 = por %p4351_p5, %p4350_p3 }
 0x394   : > { %v2798_v62 = vsel %vm2766_vm8, %v2750_v15, %v2782_v28  ;;  %vm2767_vm10 = vcmp.gt.f32.partialorder %v2751_v0, 0.0  ;;  %v2783_v24 = vmul.f32 0.01, %v2751_v0 }
 0x395   : > { %v2830_v8 = vadd.f32 %v2814_v4, %v2798_v62  ;;  %v2796_v6 = vsel %vm2764_vm9, %v2748_v22, %v2780_v36  ;;  %vm2765_vm11 = vcmp.gt.f32.partialorder %v2749_v44, 0.0  ;;  %v2781_v29 = vmul.f32 0.01, %v2749_v44  ;;  %p4346_p13 = pneg %p4345_p1 }
 0x396   : > { %v2828_v5 = vadd.f32 %v2812_v13, %v2796_v6  ;;  %v2799_v3 = vsel %vm2767_vm10, %v2751_v0, %v2783_v24 }
 0x397   : > { %2846 = vst [vmem:[%s5570_s13 + $0x70] sm:$0xff] %v2830_v8  ;;  %v2831_v47 = vadd.f32 %v2815_v45, %v2799_v3  ;;  %v2797_v46 = vsel %vm2765_vm11, %v2749_v44, %v2781_v29  ;;  %p4353_p11 = pnand %p4352_p4, %p4346_p13 }
 0x398   : > { %2844 = vst [vmem:[%s5570_s13 + $0x60] sm:$0xff] %v2828_v5  ;;  %v2829_v26 = vadd.f32 %v2813_v32, %v2797_v46 }
 0x399   : > { %2847 = vst [vmem:[%s5570_s13 + $0x78] sm:$0xff] %v2831_v47 }
 0x39a   : > { %2845 = vst [vmem:[%s5570_s13 + $0x68] sm:$0xff] %v2829_v26 }
 0x39b   : > { %4356 = shalt.err (!%p4353_p11)
}
 0x39c   : > { %s4357_s1 = scalar_lea.hbm %s5620_s24, 2048  ;;  %s4361_s16 = scalar_lea.hbm %s5828_s22, 8192 }
 0x39d   : > { %p4358_p6 = scmp.ne.s32.totalorder %s5620_s24, %s4357_s1  ;;  %p4362_p2 = scmp.lt.u32.totalorder %s5620_s24, %s5828_s22 }
 0x39e   : > { %p4363_p10 = scmp.lt.u32.totalorder %s4361_s16, %s4357_s1  ;;  %p4365_p0 = scmp.lt.u32.totalorder %s4357_s1, %s5620_s24 }
 0x39f   : > { %p4359_p9 = pnand %p4358_p6, %p5829_p12 }
 0x3a0   : > { %p4364_p8 = por %p4363_p10, %p4362_p2 }
 0x3a1   : > { %p4360_p7 = pneg %p4359_p9 }
 0x3a2   : > { %p4366_p1 = por %p4365_p0, %p4364_p8 }
 0x3a4   : > { %p4367_p13 = pnand %p4366_p1, %p4360_p7 }
 0x3a6   : > { %4370 = shalt.err (!%p4367_p13)
}
 0x3a7   : > { %s4514_s27 = smov 128   ;;  %s4515_s4 = smov 8  }
 0x3a8   : > { %3941 = dma.vmem_to_hbm [thread:$0]  (%p5829_p12), %s5614_s8, 2048, %s5620_s24, %s2849_s28, %s4514_s27, %s4514_s27, %s4515_s4  }
 0x3a9 PF: > { %s5830_s15 = sld [smem:[#allocation17_spill]]  ;;  %s5831_s21 = sld [smem:[#allocation28_spill]] }
 0x3aa   : > { %p3969_p3 = scmp.ge.s32.totalorder %s4501_s14, 2 }
 0x3af   : > { %s2880_s10 = sand.u32 1, %s5830_s15   ;;  %p5832_p5 = scmp.ne.s32.totalorder %s5831_s21, 0 }
 0x3b0   : > { %s2881_s7 = scalar_lea.sflag [#allocation4], %s2880_s10 }
 0x3b1   : > { %p3961_p4 = pnand %p3969_p3, %p5832_p5 }
 0x3b3   : > { %4444 = dma.done.wait (!%p3961_p4), %s2881_s7, 2048  }
 0x3b4   : > { %4446 = vsyncadd (!%p3961_p4), %s2881_s7, 4294965248  ;;  %s27_s14 = sadd.s32 1, %s4501_s14   ;;  %s5834_s27 = sld [smem:[#allocation18_spill]] }
 0x3b5   : > { %p5653_p11 = scmp.ge.s32.totalorder %s27_s14, 6   ;;  %s5835_s11 = sld [smem:[#allocation19_spill]] }
 0x3b6   : > { %s5836_s12 = smov %s4823_s30  ;;  %s5837_s10 = sld [smem:[#allocation22_spill]] }
 0x3b7   : > { %s5838_s18 = sld [smem:[#allocation23_spill]]  ;;  %s5839_s19 = sld [smem:[#allocation25_spill]] }
 0x3b8   : > { %s5840_s13 = sld [smem:[#allocation30_spill]]  ;;  %s5841_s24 = smov %s4453_s25 }
 0x3b9   : > { %s5842_s25 = smov %s4457_s26  ;;  %s5843_s26 = smov %s4908_s17 }
 0x3ba   : > { %s5844_s28 = smov %s4469_s29  ;;  %s5845_s29 = smov %s4832_s20 }
 0x3bb   : > { %s5846_s30 = smov %s5835_s11  ;;  %s5847_s8 = smov %s4481_s9 }
 0x3bc   : > { %s5848_s9 = smov %s5836_s12  ;;  %26 = sbr.rel (!%p5653_p11) target bundleno = 21 (0x15), region = 133 }
 0x3bd   : > { %s5849_s11 = smov %s5838_s18  ;;  %s5850_s12 = smov %s5839_s19 }
 0x3c3   :  { %2886 = vsyncpa [#allocation3], 1 }
 0x3c4   :  { %2888 = vsyncpa [#allocation3 + $0x1], 1 }
 0x3c5   :  { %2889 = vsyncpa [#allocation6], 1 }
 0x3c6   :  { %2891 = vsyncpa [#allocation6 + $0x1], 1 }
 0x3c7   :  { %2892 = vsyncpa [#allocation9], 1 }
 0x3c8   :  { %2893 = vsyncpa [#allocation4], 1 }
 0x3c9   :  { %2895 = vsyncpa [#allocation4 + $0x1], 1 }

</bundles_post_ra>
